<compile_context>
chip_gen: v6e
topology: v6e:2x2x1
jax: 0.10.0
libtpu: 0.0.40
codegen_flags: <defaults>
</compile_context>

<pallas_src>
import functools

import jax
import jax.numpy as jnp
from jax.experimental import pallas as pl
from jax.experimental.pallas import tpu as pltpu


_COMPUTE_DTYPE = jnp.bfloat16            # MXU operand dtype; accumulation stays f32
_WEIGHT_RESIDENT_BYTES = 8 * 1024 * 1024  # keep weight fully VMEM-resident below this


# --------------------------------------------------------------------------
# Tile / compiler-parameter helpers
# --------------------------------------------------------------------------

@functools.lru_cache(maxsize=None)
def _vmem_limit_bytes():
    """Per-generation scoped-VMEM budget: ~half of physical VMEM, clamped 32..96 MiB.

    v5e/v6e (128 MiB physical) -> 64 MiB, v7x (64 MiB physical) -> 32 MiB.
    """
    try:
        phys = pltpu.get_tpu_info().vmem_capacity_bytes
        return int(min(max(phys // 2, 32 * 1024 * 1024), 96 * 1024 * 1024))
    except Exception:
        return 32 * 1024 * 1024


def _cparams(semantics):
    return pltpu.CompilerParams(dimension_semantics=semantics,
                                vmem_limit_bytes=_vmem_limit_bytes())


def _row_tile(m, target=256):
    """Largest tile <= target that divides m, preferring multiples of 8."""
    if m <= target:
        return m
    best = None
    for t in range(target, 0, -1):
        if m % t == 0:
            if t % 8 == 0:
                return t
            if best is None:
                best = t
    # TODO(synk): pad M (or use masked tails) for awkward row counts instead of a
    # whole-array fallback block; falling back keeps correctness but may blow VMEM.
    return best if (best is not None and best >= 8) else m


def _col_tile(n, target=512):
    """Lane (last-dim) tile: keep full n unless n is a large multiple of 128."""
    if n <= target or n % 128 != 0:
        return n
    t = target
    while t >= 128:
        if n % t == 0:
            return t
        t //= 2
    return n


# --------------------------------------------------------------------------
# Pallas kernels
# --------------------------------------------------------------------------

def _matmul_bias_act_kernel(x_ref, w_ref, b_ref, o_ref, *, activation):
    """o = act(x @ w + b); x:[tm,K] w:[K,tn] b:[1,tn] o:[tm,tn]; f32 accumulation."""
    y = jnp.dot(x_ref[...], w_ref[...], preferred_element_type=jnp.float32)
    y = y + b_ref[...].astype(jnp.float32)
    if activation == "gelu":
        # TODO(synk): BERT uses exact erf-GELU; tanh approximation used here.
        c = jnp.float32(0.7978845608028654)  # sqrt(2/pi)
        y = 0.5 * y * (1.0 + jnp.tanh(c * (y + 0.044715 * y * y * y)))
    elif activation == "tanh":
        y = jnp.tanh(y)
    o_ref[...] = y.astype(o_ref.dtype)


def _matmul_bias_res_ln_kernel(x_ref, w_ref, b_ref, r_ref, g_ref, bb_ref, o_ref, *, eps):
    """o = LayerNorm(x @ w + b + r) * g + bb (projection + residual + LN fused)."""
    y = jnp.dot(x_ref[...], w_ref[...], preferred_element_type=jnp.float32)
    h = y + b_ref[...].astype(jnp.float32) + r_ref[...].astype(jnp.float32)
    # One-pass LN statistics: E[x] and E[x^2]  ->  single set of lane reductions.
    mean = jnp.mean(h, axis=-1, keepdims=True)
    msq = jnp.mean(h * h, axis=-1, keepdims=True)
    var = jnp.maximum(msq - mean * mean, 0.0)
    out = (h - mean) * jax.lax.rsqrt(var + eps)
    out = out * g_ref[...].astype(jnp.float32) + bb_ref[...].astype(jnp.float32)
    o_ref[...] = out.astype(o_ref.dtype)


def _embed_ln_kernel(we_ref, pos_ref, typ_ref, g_ref, b_ref, o_ref, *, eps):
    """o = LayerNorm(word_emb + pos_emb + type_emb) * g + b, fused in one pass."""
    h = (we_ref[0].astype(jnp.float32)
         + pos_ref[...].astype(jnp.float32)
         + typ_ref[...].astype(jnp.float32))
    mean = jnp.mean(h, axis=-1, keepdims=True)
    msq = jnp.mean(h * h, axis=-1, keepdims=True)
    var = jnp.maximum(msq - mean * mean, 0.0)
    out = (h - mean) * jax.lax.rsqrt(var + eps)
    out = out * g_ref[...].astype(jnp.float32) + b_ref[...].astype(jnp.float32)
    o_ref[0] = out.astype(o_ref.dtype)


def _attention_kernel(q_ref, kv_ref, o_ref, *, nh, dh):
    """Softmax attention for one (batch, q-tile), all heads in-kernel.

    q_ref : [1, tq, H or 3H]  fused QKV rows for the q tile (Q in cols [0:H],
                              already pre-scaled by 1/sqrt(dh) in the weights)
    kv_ref: [1, S, 3H]        fused QKV rows for the whole sequence
    o_ref : [1, tq, H]        lane-dense context slab (heads packed along lanes)
    """
    H = nh * dh
    q_all = q_ref[0]
    kv_all = kv_ref[0]
    ctx = []
    for h in range(nh):
        qh = q_all[:, h * dh:(h + 1) * dh]                       # [tq, dh]
        kh = kv_all[:, H + h * dh:H + (h + 1) * dh]              # [S,  dh]
        vh = kv_all[:, 2 * H + h * dh:2 * H + (h + 1) * dh]      # [S,  dh]
        s = jax.lax.dot_general(qh, kh, (((1,), (1,)), ((), ())),
                                preferred_element_type=jnp.float32)  # [tq, S]
        m = jnp.max(s, axis=-1, keepdims=True)
        p = jnp.exp(s - m)
        inv = pl.reciprocal(jnp.sum(p, axis=-1, keepdims=True), approx=True)  # EUP slot
        p = p * inv
        ctx.append(jnp.dot(p.astype(vh.dtype), vh,
                           preferred_element_type=jnp.float32))  # [tq, dh]
    o_ref[0] = jnp.concatenate(ctx, axis=-1).astype(o_ref.dtype)


# --------------------------------------------------------------------------
# Pallas wrappers
# --------------------------------------------------------------------------

def matmul_bias_act(x, w, b, activation="none", out_dtype=None,
                    tm_target=256, tn_target=512):
    M, K = x.shape
    _, N = w.shape
    out_dtype = out_dtype or x.dtype
    tm = _row_tile(M, tm_target)
    w_bytes = w.size * jnp.dtype(w.dtype).itemsize

    if w_bytes <= _WEIGHT_RESIDENT_BYTES:
        # Weight stays VMEM-resident (constant index_map -> fetched from HBM once).
        grid = (M // tm,)
        in_specs = [
            pl.BlockSpec((tm, K), lambda i: (i, 0)),
            pl.BlockSpec((K, N), lambda i: (0, 0)),
            pl.BlockSpec((1, N), lambda i: (0, 0)),
        ]
        out_specs = pl.BlockSpec((tm, N), lambda i: (i, 0))
        semantics = ("parallel",)
    else:
        # Fallback: weight constant along the inner (row) axis, streamed once per
        # column tile; only the (smaller) activation matrix is re-streamed.
        tn = _col_tile(N, tn_target)
        grid = (N // tn, M // tm)
        in_specs = [
            pl.BlockSpec((tm, K), lambda j, i: (i, 0)),
            pl.BlockSpec((K, tn), lambda j, i: (0, j)),
            pl.BlockSpec((1, tn), lambda j, i: (0, j)),
        ]
        out_specs = pl.BlockSpec((tm, tn), lambda j, i: (i, j))
        semantics = ("parallel", "parallel")

    return pl.pallas_call(
        functools.partial(_matmul_bias_act_kernel, activation=activation),
        out_shape=jax.ShapeDtypeStruct((M, N), out_dtype),
        grid=grid,
        in_specs=in_specs,
        out_specs=out_specs,
        compiler_params=_cparams(semantics),
    )(x, w, b.reshape(1, N))


def matmul_bias_residual_layernorm(x, w, b, res, gamma, beta, eps=1e-12,
                                   out_dtype=None, tm_target=256):
    M, K = x.shape
    _, N = w.shape
    out_dtype = out_dtype or res.dtype
    tm = _row_tile(M, tm_target)
    grid = (M // tm,)
    return pl.pallas_call(
        functools.partial(_matmul_bias_res_ln_kernel, eps=eps),
        out_shape=jax.ShapeDtypeStruct((M, N), out_dtype),
        grid=grid,
        in_specs=[
            pl.BlockSpec((tm, K), lambda i: (i, 0)),
            pl.BlockSpec((K, N), lambda i: (0, 0)),      # resident weight
            pl.BlockSpec((1, N), lambda i: (0, 0)),
            pl.BlockSpec((tm, N), lambda i: (i, 0)),
            pl.BlockSpec((1, N), lambda i: (0, 0)),
            pl.BlockSpec((1, N), lambda i: (0, 0)),
        ],
        out_specs=pl.BlockSpec((tm, N), lambda i: (i, 0)),
        compiler_params=_cparams(("parallel",)),
    )(x, w, b.reshape(1, N), res, gamma.reshape(1, N), beta.reshape(1, N))


def embed_layernorm(word_emb, pos_emb, type_row, gamma, beta, eps=1e-12,
                    out_dtype=None, ts_target=256):
    """LayerNorm(word_emb + pos_emb + type_emb) without materializing the sum in HBM."""
    B, S, H = word_emb.shape
    out_dtype = out_dtype or word_emb.dtype
    ts = _row_tile(S, ts_target)
    grid = (B, S // ts)
    out = pl.pallas_call(
        functools.partial(_embed_ln_kernel, eps=eps),
        out_shape=jax.ShapeDtypeStruct((B, S, H), out_dtype),
        grid=grid,
        in_specs=[
            pl.BlockSpec((1, ts, H), lambda b, i: (b, i, 0)),
            pl.BlockSpec((ts, H), lambda b, i: (i, 0)),
            pl.BlockSpec((1, H), lambda b, i: (0, 0)),
            pl.BlockSpec((1, H), lambda b, i: (0, 0)),
            pl.BlockSpec((1, H), lambda b, i: (0, 0)),
        ],
        out_specs=pl.BlockSpec((1, ts, H), lambda b, i: (b, i, 0)),
        compiler_params=_cparams(("parallel", "parallel")),
    )(word_emb, pos_emb, type_row.reshape(1, H),
      gamma.reshape(1, H), beta.reshape(1, H))
    return out.reshape(B * S, H)


def attention(qkv, B, S, H, nh, tq_target=256):
    """Multi-head attention on the fused [M, 3H] QKV buffer; output is [M, H]."""
    dh = H // nh
    qkv3 = qkv.reshape(B, S, 3 * H)
    tq = _row_tile(S, tq_target)
    grid = (B, S // tq)
    # For the q-tile block only the Q columns are needed; restrict to [0:H] when
    # H is a lane-aligned multiple of 128, otherwise fetch the full 3H slab.
    q_cols = H if H % 128 == 0 else 3 * H
    out = pl.pallas_call(
        functools.partial(_attention_kernel, nh=nh, dh=dh),
        out_shape=jax.ShapeDtypeStruct((B, S, H), qkv.dtype),
        grid=grid,
        in_specs=[
            pl.BlockSpec((1, tq, q_cols), lambda b, i: (b, i, 0)),
            pl.BlockSpec((1, S, 3 * H), lambda b, i: (b, 0, 0)),
        ],
        out_specs=pl.BlockSpec((1, tq, H), lambda b, i: (b, i, 0)),
        compiler_params=_cparams(("parallel", "parallel")),
    )(qkv3, qkv3)
    return out.reshape(B * S, H)


# --------------------------------------------------------------------------
# BERT-style encoder forward (returns pooled CLS vector, like the PyTorch module)
# --------------------------------------------------------------------------

def encoder_forward(token_ids, params, cfg):
    B, S = token_ids.shape
    H, nh = cfg["hidden"], cfg["heads"]
    M = B * S

    # Embedding gather is plain-JAX glue; the pos/type adds + LayerNorm are fused
    # into one Pallas kernel (token-type 0 only: BertModel defaults to zeros).
    we = jnp.take(params["word_emb"], token_ids, axis=0)           # [B, S, H] bf16
    x = embed_layernorm(we, params["pos_emb"][:S], params["type_emb"][0],
                        params["emb_ln_g"], params["emb_ln_b"],
                        out_dtype=_COMPUTE_DTYPE)                  # [M, H]

    for lyr in params["layers"]:
        # Fused Q/K/V projection (Q columns pre-scaled by 1/sqrt(dh) in the weights).
        qkv = matmul_bias_act(x, lyr["wqkv"], lyr["bqkv"])          # [M, 3H]
        # Attention with in-kernel head split and lane-dense [M, H] output
        # (no XLA head reshuffle transposes).
        ctx = attention(qkv, B, S, H, nh)
        # Attention output projection fused with bias + residual + LayerNorm.
        x = matmul_bias_residual_layernorm(ctx, lyr["wo"], lyr["bo"], x,
                                           lyr["ln1_g"], lyr["ln1_b"])
        # FFN: W1 + GELU (weight resident), then W2 fused with bias + residual + LN.
        h1 = matmul_bias_act(x, lyr["w1"], lyr["b1"], activation="gelu")
        x = matmul_bias_residual_layernorm(h1, lyr["w2"], lyr["b2"], x,
                                           lyr["ln2_g"], lyr["ln2_b"])

    cls = x.reshape(B, S, H)[:, 0, :]                              # CLS hidden state
    pooled = matmul_bias_act(cls, params["wp"], params["bp"], activation="tanh",
                             out_dtype=jnp.float32)
    return pooled                                                  # [B, H] == cls_tokens


# --------------------------------------------------------------------------
# Deterministic parameter init (synthetic weights)
# --------------------------------------------------------------------------

def init_params(key, *, vocab, max_pos, hidden, heads, inter, n_layers):
    H = hidden
    dh = H // heads
    q_scale = 1.0 / (dh ** 0.5)

    def normal(k, shape, dtype=_COMPUTE_DTYPE):
        return (0.02 * jax.random.normal(k, shape, dtype=jnp.float32)).astype(dtype)

    keys = jax.random.split(key, 4 + n_layers)
    params = {
        # Embedding tables stored bf16 to halve gather traffic; LN math stays f32.
        "word_emb": normal(keys[0], (vocab, H)),
        "pos_emb": normal(keys[1], (max_pos, H)),
        "type_emb": normal(keys[2], (2, H)),
        "emb_ln_g": jnp.ones((H,), jnp.float32),
        "emb_ln_b": jnp.zeros((H,), jnp.float32),
        "wp": normal(keys[3], (H, H)),
        "bp": jnp.zeros((H,), jnp.float32),
        "layers": [],
    }
    for li in range(n_layers):
        lk = jax.random.split(keys[4 + li], 4)
        wqkv = normal(lk[0], (H, 3 * H))                            # [Wq | Wk | Wv]
        # Fold the 1/sqrt(dh) attention scale into the Q projection (weights + bias)
        # at load time, so the attention kernel does no per-tile scaling.
        wqkv = wqkv.at[:, :H].multiply(jnp.asarray(q_scale, wqkv.dtype))
        bqkv = jnp.zeros((3 * H,), jnp.float32)
        bqkv = bqkv.at[:H].multiply(q_scale)                        # no-op for zeros
        params["layers"].append({
            "wqkv": wqkv, "bqkv": bqkv,
            "wo": normal(lk[1], (H, H)), "bo": jnp.zeros((H,), jnp.float32),
            "ln1_g": jnp.ones((H,), jnp.float32), "ln1_b": jnp.zeros((H,), jnp.float32),
            "w1": normal(lk[2], (H, inter)), "b1": jnp.zeros((inter,), jnp.float32),
            "w2": normal(lk[3], (inter, H)), "b2": jnp.zeros((H,), jnp.float32),
            "ln2_g": jnp.ones((H,), jnp.float32), "ln2_b": jnp.zeros((H,), jnp.float32),
        })
    return params


# --------------------------------------------------------------------------
# Main
# --------------------------------------------------------------------------

if __name__ == "__main__":
    cfg = dict(vocab=64, max_pos=16, hidden=32, heads=2, inter=64, n_layers=2)

    key = jax.random.PRNGKey(0)
    pkey, tkey = jax.random.split(key)
    params = init_params(pkey, **cfg)

    B, S = 2, 8
    token_ids = jax.random.randint(tkey, (B, S), 0, cfg["vocab"], dtype=jnp.int32)
    token_ids = token_ids.at[:, 0].set(1)  # pretend CLS id

    fwd_cfg = {"hidden": cfg["hidden"], "heads": cfg["heads"]}
    fwd = jax.jit(lambda ids, p: encoder_forward(ids, p, fwd_cfg))
    cls_tokens = fwd(token_ids, params)
    cls_tokens = jax.block_until_ready(cls_tokens)

    assert cls_tokens.shape == (B, cfg["hidden"])
    assert cls_tokens.dtype == jnp.float32
    assert bool(jnp.all(jnp.isfinite(cls_tokens)))
    print("KERNEL_OK")
</pallas_src>

<mosaic_0001>
module attributes {stable_mosaic.version = 11 : i64} {
  func.func @_matmul_bias_act_kernel(%arg0: i32, %arg1: memref<16x32xbf16, #tpu.memory_space<vmem>>, %arg2: memref<32x96xbf16, #tpu.memory_space<vmem>>, %arg3: memref<1x96xf32, #tpu.memory_space<vmem>>, %arg4: memref<16x96xbf16, #tpu.memory_space<vmem>>) attributes {dimension_semantics = [#tpu.dimension_semantics<parallel>], iteration_bounds = array<i64: 1>, scalar_prefetch = 0 : i64, scratch_operands = 0 : i64, tpu.core_type = #tpu.core_type<tc>, window_params = [{transform_indices = @transform_0, window_bounds = array<i64: 16, 32>}, {pipeline_mode = #tpu.pipeline_mode<synchronous>, transform_indices = @transform_1, window_bounds = array<i64: 32, 96>}, {pipeline_mode = #tpu.pipeline_mode<synchronous>, transform_indices = @transform_2, window_bounds = array<i64: 1, 96>}, {transform_indices = @transform_3, window_bounds = array<i64: 16, 96>}]} {
    %c0 = arith.constant 0 : index
    %c0_0 = arith.constant 0 : index
    %0 = vector.load %arg1[%c0, %c0_0] : memref<16x32xbf16, #tpu.memory_space<vmem>>, vector<16x32xbf16>
    %c0_1 = arith.constant 0 : index
    %c0_2 = arith.constant 0 : index
    %1 = vector.load %arg2[%c0_1, %c0_2] : memref<32x96xbf16, #tpu.memory_space<vmem>>, vector<32x96xbf16>
    %cst = arith.constant dense<0.000000e+00> : vector<16x96xf32>
    %2 = tpu.matmul %0, %1, %cst {dimension_numbers = #tpu.dot_dimension_numbers<[1], [0], [0], [1], [0, 0, 1, 1], [], []>} : vector<16x32xbf16>, vector<32x96xbf16>, vector<16x96xf32> -> vector<16x96xf32>
    %c0_3 = arith.constant 0 : index
    %c0_4 = arith.constant 0 : index
    %3 = vector.load %arg3[%c0_3, %c0_4] : memref<1x96xf32, #tpu.memory_space<vmem>>, vector<1x96xf32>
    %4 = vector.broadcast %3 : vector<1x96xf32> to vector<16x96xf32>
    %5 = arith.addf %2, %4 : vector<16x96xf32>
    %6 = arith.truncf %5 : vector<16x96xf32> to vector<16x96xbf16>
    %c0_5 = arith.constant 0 : index
    %c0_6 = arith.constant 0 : index
    %7 = vector.load %arg4[%c0_5, %c0_6] : memref<16x96xbf16, #tpu.memory_space<vmem>>, vector<16x96xbf16>
    tpu.vector_store %arg4[%c0_5, %c0_6], %6 {strides = array<i32>} : memref<16x96xbf16, #tpu.memory_space<vmem>>, vector<16x96xbf16>,
    return
  }
  func.func @transform_0(%arg0: i32) -> (i32, i32) {
    %c0_i32 = arith.constant 0 : i32
    %c0_i32_0 = arith.constant 0 : i32
    return %arg0, %c0_i32 : i32, i32
  }
  func.func @transform_1(%arg0: i32) -> (i32, i32) {
    %c0_i32 = arith.constant 0 : i32
    %c0_i32_0 = arith.constant 0 : i32
    %c0_i32_1 = arith.constant 0 : i32
    return %c0_i32, %c0_i32_0 : i32, i32
  }
  func.func @transform_2(%arg0: i32) -> (i32, i32) {
    %c0_i32 = arith.constant 0 : i32
    %c0_i32_0 = arith.constant 0 : i32
    %c0_i32_1 = arith.constant 0 : i32
    return %c0_i32, %c0_i32_0 : i32, i32
  }
  func.func @transform_3(%arg0: i32) -> (i32, i32) {
    %c0_i32 = arith.constant 0 : i32
    %c0_i32_0 = arith.constant 0 : i32
    return %arg0, %c0_i32 : i32, i32
  }
}

module attributes {stable_mosaic.version = 11 : i64} {
  func.func @_attention_kernel(%arg0: i32, %arg1: i32, %arg2: memref<1x8x96xbf16, #tpu.memory_space<vmem>>, %arg3: memref<1x8x96xbf16, #tpu.memory_space<vmem>>, %arg4: memref<1x8x32xbf16, #tpu.memory_space<vmem>>) attributes {dimension_semantics = [#tpu.dimension_semantics<parallel>, #tpu.dimension_semantics<parallel>], iteration_bounds = array<i64: 2, 1>, scalar_prefetch = 0 : i64, scratch_operands = 0 : i64, tpu.core_type = #tpu.core_type<tc>, window_params = [{transform_indices = @transform_0, window_bounds = array<i64: 1, 8, 96>}, {transform_indices = @transform_1, window_bounds = array<i64: 1, 8, 96>}, {transform_indices = @transform_2, window_bounds = array<i64: 1, 8, 32>}]} {
    %c0 = arith.constant 0 : index
    %c0_0 = arith.constant 0 : index
    %c0_1 = arith.constant 0 : index
    %0 = vector.load %arg2[%c0, %c0_0, %c0_1] : memref<1x8x96xbf16, #tpu.memory_space<vmem>>, vector<1x8x96xbf16>
    %1 = vector.shape_cast %0 : vector<1x8x96xbf16> to vector<8x96xbf16>
    %c0_2 = arith.constant 0 : index
    %c0_3 = arith.constant 0 : index
    %c0_4 = arith.constant 0 : index
    %2 = vector.load %arg3[%c0_2, %c0_3, %c0_4] : memref<1x8x96xbf16, #tpu.memory_space<vmem>>, vector<1x8x96xbf16>
    %3 = vector.shape_cast %2 : vector<1x8x96xbf16> to vector<8x96xbf16>
    %4 = vector.extract_strided_slice %1 {offsets = [0, 0], sizes = [8, 16], strides = [1, 1]} : vector<8x96xbf16> to vector<8x16xbf16>
    %5 = vector.extract_strided_slice %3 {offsets = [0, 32], sizes = [8, 16], strides = [1, 1]} : vector<8x96xbf16> to vector<8x16xbf16>
    %6 = vector.extract_strided_slice %3 {offsets = [0, 64], sizes = [8, 16], strides = [1, 1]} : vector<8x96xbf16> to vector<8x16xbf16>
    %cst = arith.constant dense<0.000000e+00> : vector<8x8xf32>
    %7 = tpu.matmul %4, %5, %cst {dimension_numbers = #tpu.dot_dimension_numbers<[1], [1], [0], [0], [0, 0, 1, 0], [], []>} : vector<8x16xbf16>, vector<8x16xbf16>, vector<8x8xf32> -> vector<8x8xf32>
    %cst_5 = arith.constant dense<0xFF800000> : vector<8xf32>
    %8 = vector.multi_reduction <maximumf>, %7, %cst_5 [1] : vector<8x8xf32> to vector<8xf32>
    %9 = vector.shape_cast %8 : vector<8xf32> to vector<8x1xf32>
    %10 = vector.broadcast %9 : vector<8x1xf32> to vector<8x8xf32>
    %11 = arith.subf %7, %10 : vector<8x8xf32>
    %12 = math.exp %11 : vector<8x8xf32>
    %cst_6 = arith.constant dense<0.000000e+00> : vector<8xf32>
    %13 = vector.multi_reduction <add>, %12, %cst_6 [1] : vector<8x8xf32> to vector<8xf32>
    %14 = vector.shape_cast %13 : vector<8xf32> to vector<8x1xf32>
    %15 = tpu.reciprocal %14 {approx = true} : vector<8x1xf32> -> vector<8x1xf32>
    %16 = vector.broadcast %15 : vector<8x1xf32> to vector<8x8xf32>
    %17 = arith.mulf %12, %16 : vector<8x8xf32>
    %18 = arith.truncf %17 : vector<8x8xf32> to vector<8x8xbf16>
    %cst_7 = arith.constant dense<0.000000e+00> : vector<8x16xf32>
    %19 = tpu.matmul %18, %6, %cst_7 {dimension_numbers = #tpu.dot_dimension_numbers<[1], [0], [0], [1], [0, 0, 1, 1], [], []>} : vector<8x8xbf16>, vector<8x16xbf16>, vector<8x16xf32> -> vector<8x16xf32>
    %20 = vector.extract_strided_slice %1 {offsets = [0, 16], sizes = [8, 16], strides = [1, 1]} : vector<8x96xbf16> to vector<8x16xbf16>
    %21 = vector.extract_strided_slice %3 {offsets = [0, 48], sizes = [8, 16], strides = [1, 1]} : vector<8x96xbf16> to vector<8x16xbf16>
    %22 = vector.extract_strided_slice %3 {offsets = [0, 80], sizes = [8, 16], strides = [1, 1]} : vector<8x96xbf16> to vector<8x16xbf16>
    %cst_8 = arith.constant dense<0.000000e+00> : vector<8x8xf32>
    %23 = tpu.matmul %20, %21, %cst_8 {dimension_numbers = #tpu.dot_dimension_numbers<[1], [1], [0], [0], [0, 0, 1, 0], [], []>} : vector<8x16xbf16>, vector<8x16xbf16>, vector<8x8xf32> -> vector<8x8xf32>
    %cst_9 = arith.constant dense<0xFF800000> : vector<8xf32>
    %24 = vector.multi_reduction <maximumf>, %23, %cst_9 [1] : vector<8x8xf32> to vector<8xf32>
    %25 = vector.shape_cast %24 : vector<8xf32> to vector<8x1xf32>
    %26 = vector.broadcast %25 : vector<8x1xf32> to vector<8x8xf32>
    %27 = arith.subf %23, %26 : vector<8x8xf32>
    %28 = math.exp %27 : vector<8x8xf32>
    %cst_10 = arith.constant dense<0.000000e+00> : vector<8xf32>
    %29 = vector.multi_reduction <add>, %28, %cst_10 [1] : vector<8x8xf32> to vector<8xf32>
    %30 = vector.shape_cast %29 : vector<8xf32> to vector<8x1xf32>
    %31 = tpu.reciprocal %30 {approx = true} : vector<8x1xf32> -> vector<8x1xf32>
    %32 = vector.broadcast %31 : vector<8x1xf32> to vector<8x8xf32>
    %33 = arith.mulf %28, %32 : vector<8x8xf32>
    %34 = arith.truncf %33 : vector<8x8xf32> to vector<8x8xbf16>
    %cst_11 = arith.constant dense<0.000000e+00> : vector<8x16xf32>
    %35 = tpu.matmul %34, %22, %cst_11 {dimension_numbers = #tpu.dot_dimension_numbers<[1], [0], [0], [1], [0, 0, 1, 1], [], []>} : vector<8x8xbf16>, vector<8x16xbf16>, vector<8x16xf32> -> vector<8x16xf32>
    %36 = tpu.concatenate %19, %35 in 1 : vector<8x16xf32>, vector<8x16xf32> -> vector<8x32xf32>
    %37 = arith.truncf %36 : vector<8x32xf32> to vector<8x32xbf16>
    %c0_12 = arith.constant 0 : index
    %c0_13 = arith.constant 0 : index
    %c0_14 = arith.constant 0 : index
    %38 = vector.load %arg4[%c0_12, %c0_13, %c0_14] : memref<1x8x32xbf16, #tpu.memory_space<vmem>>, vector<1x8x32xbf16>
    %39 = vector.shape_cast %38 : vector<1x8x32xbf16> to vector<8x32xbf16>
    %40 = vector.shape_cast %37 : vector<8x32xbf16> to vector<1x8x32xbf16>
    tpu.vector_store %arg4[%c0_12, %c0_13, %c0_14], %40 {strides = array<i32>} : memref<1x8x32xbf16, #tpu.memory_space<vmem>>, vector<1x8x32xbf16>,
    return
  }
  func.func @transform_0(%arg0: i32, %arg1: i32) -> (i32, i32, i32) {
    %c0_i32 = arith.constant 0 : i32
    %c0_i32_0 = arith.constant 0 : i32
    return %arg0, %arg1, %c0_i32 : i32, i32, i32
  }
  func.func @transform_1(%arg0: i32, %arg1: i32) -> (i32, i32, i32) {
    %c0_i32 = arith.constant 0 : i32
    %c0_i32_0 = arith.constant 0 : i32
    %c0_i32_1 = arith.constant 0 : i32
    return %arg0, %c0_i32, %c0_i32_0 : i32, i32, i32
  }
  func.func @transform_2(%arg0: i32, %arg1: i32) -> (i32, i32, i32) {
    %c0_i32 = arith.constant 0 : i32
    %c0_i32_0 = arith.constant 0 : i32
    return %arg0, %arg1, %c0_i32 : i32, i32, i32
  }
}

module attributes {stable_mosaic.version = 11 : i64} {
  func.func @_embed_ln_kernel(%arg0: i32, %arg1: i32, %arg2: memref<1x8x32xbf16, #tpu.memory_space<vmem>>, %arg3: memref<8x32xbf16, #tpu.memory_space<vmem>>, %arg4: memref<1x32xbf16, #tpu.memory_space<vmem>>, %arg5: memref<1x32xf32, #tpu.memory_space<vmem>>, %arg6: memref<1x32xf32, #tpu.memory_space<vmem>>, %arg7: memref<1x8x32xbf16, #tpu.memory_space<vmem>>) attributes {dimension_semantics = [#tpu.dimension_semantics<parallel>, #tpu.dimension_semantics<parallel>], iteration_bounds = array<i64: 2, 1>, scalar_prefetch = 0 : i64, scratch_operands = 0 : i64, tpu.core_type = #tpu.core_type<tc>, window_params = [{transform_indices = @transform_0, window_bounds = array<i64: 1, 8, 32>}, {transform_indices = @transform_1, window_bounds = array<i64: 8, 32>}, {pipeline_mode = #tpu.pipeline_mode<synchronous>, transform_indices = @transform_2, window_bounds = array<i64: 1, 32>}, {pipeline_mode = #tpu.pipeline_mode<synchronous>, transform_indices = @transform_3, window_bounds = array<i64: 1, 32>}, {pipeline_mode = #tpu.pipeline_mode<synchronous>, transform_indices = @transform_4, window_bounds = array<i64: 1, 32>}, {transform_indices = @transform_5, window_bounds = array<i64: 1, 8, 32>}]} {
    %c0 = arith.constant 0 : index
    %c0_0 = arith.constant 0 : index
    %c0_1 = arith.constant 0 : index
    %0 = vector.load %arg2[%c0, %c0_0, %c0_1] : memref<1x8x32xbf16, #tpu.memory_space<vmem>>, vector<1x8x32xbf16>
    %1 = vector.shape_cast %0 : vector<1x8x32xbf16> to vector<8x32xbf16>
    %2 = arith.extf %1 : vector<8x32xbf16> to vector<8x32xf32>
    %c0_2 = arith.constant 0 : index
    %c0_3 = arith.constant 0 : index
    %3 = vector.load %arg3[%c0_2, %c0_3] : memref<8x32xbf16, #tpu.memory_space<vmem>>, vector<8x32xbf16>
    %4 = arith.extf %3 : vector<8x32xbf16> to vector<8x32xf32>
    %5 = arith.addf %2, %4 : vector<8x32xf32>
    %c0_4 = arith.constant 0 : index
    %c0_5 = arith.constant 0 : index
    %6 = vector.load %arg4[%c0_4, %c0_5] : memref<1x32xbf16, #tpu.memory_space<vmem>>, vector<1x32xbf16>
    %7 = arith.extf %6 : vector<1x32xbf16> to vector<1x32xf32>
    %8 = vector.broadcast %7 : vector<1x32xf32> to vector<8x32xf32>
    %9 = arith.addf %5, %8 : vector<8x32xf32>
    %cst = arith.constant dense<0.000000e+00> : vector<8xf32>
    %10 = vector.multi_reduction <add>, %9, %cst [1] : vector<8x32xf32> to vector<8xf32>
    %11 = vector.shape_cast %10 : vector<8xf32> to vector<8x1xf32>
    %cst_6 = arith.constant 3.200000e+01 : f32
    %12 = vector.broadcast %cst_6 : f32 to vector<8x1xf32>
    %13 = arith.divf %11, %12 : vector<8x1xf32>
    %14 = arith.mulf %9, %9 : vector<8x32xf32>
    %cst_7 = arith.constant dense<0.000000e+00> : vector<8xf32>
    %15 = vector.multi_reduction <add>, %14, %cst_7 [1] : vector<8x32xf32> to vector<8xf32>
    %16 = vector.shape_cast %15 : vector<8xf32> to vector<8x1xf32>
    %cst_8 = arith.constant 3.200000e+01 : f32
    %17 = vector.broadcast %cst_8 : f32 to vector<8x1xf32>
    %18 = arith.divf %16, %17 : vector<8x1xf32>
    %19 = arith.mulf %13, %13 : vector<8x1xf32>
    %20 = arith.subf %18, %19 : vector<8x1xf32>
    %cst_9 = arith.constant 0.000000e+00 : f32
    %21 = vector.broadcast %cst_9 : f32 to vector<8x1xf32>
    %22 = arith.maximumf %20, %21 : vector<8x1xf32>
    %23 = vector.broadcast %13 : vector<8x1xf32> to vector<8x32xf32>
    %24 = arith.subf %9, %23 : vector<8x32xf32>
    %cst_10 = arith.constant 9.99999996E-13 : f32
    %25 = vector.broadcast %cst_10 : f32 to vector<8x1xf32>
    %26 = arith.addf %22, %25 : vector<8x1xf32>
    %27 = math.rsqrt %26 : vector<8x1xf32>
    %28 = vector.broadcast %27 : vector<8x1xf32> to vector<8x32xf32>
    %29 = arith.mulf %24, %28 : vector<8x32xf32>
    %c0_11 = arith.constant 0 : index
    %c0_12 = arith.constant 0 : index
    %30 = vector.load %arg5[%c0_11, %c0_12] : memref<1x32xf32, #tpu.memory_space<vmem>>, vector<1x32xf32>
    %31 = vector.broadcast %30 : vector<1x32xf32> to vector<8x32xf32>
    %32 = arith.mulf %29, %31 : vector<8x32xf32>
    %c0_13 = arith.constant 0 : index
    %c0_14 = arith.constant 0 : index
    %33 = vector.load %arg6[%c0_13, %c0_14] : memref<1x32xf32, #tpu.memory_space<vmem>>, vector<1x32xf32>
    %34 = vector.broadcast %33 : vector<1x32xf32> to vector<8x32xf32>
    %35 = arith.addf %32, %34 : vector<8x32xf32>
    %36 = arith.truncf %35 : vector<8x32xf32> to vector<8x32xbf16>
    %c0_15 = arith.constant 0 : index
    %c0_16 = arith.constant 0 : index
    %c0_17 = arith.constant 0 : index
    %37 = vector.load %arg7[%c0_15, %c0_16, %c0_17] : memref<1x8x32xbf16, #tpu.memory_space<vmem>>, vector<1x8x32xbf16>
    %38 = vector.shape_cast %37 : vector<1x8x32xbf16> to vector<8x32xbf16>
    %39 = vector.shape_cast %36 : vector<8x32xbf16> to vector<1x8x32xbf16>
    tpu.vector_store %arg7[%c0_15, %c0_16, %c0_17], %39 {strides = array<i32>} : memref<1x8x32xbf16, #tpu.memory_space<vmem>>, vector<1x8x32xbf16>,
    return
  }
  func.func @transform_0(%arg0: i32, %arg1: i32) -> (i32, i32, i32) {
    %c0_i32 = arith.constant 0 : i32
    %c0_i32_0 = arith.constant 0 : i32
    return %arg0, %arg1, %c0_i32 : i32, i32, i32
  }
  func.func @transform_1(%arg0: i32, %arg1: i32) -> (i32, i32) {
    %c0_i32 = arith.constant 0 : i32
    %c0_i32_0 = arith.constant 0 : i32
    return %arg1, %c0_i32 : i32, i32
  }
  func.func @transform_2(%arg0: i32, %arg1: i32) -> (i32, i32) {
    %c0_i32 = arith.constant 0 : i32
    %c0_i32_0 = arith.constant 0 : i32
    %c0_i32_1 = arith.constant 0 : i32
    return %c0_i32, %c0_i32_0 : i32, i32
  }
  func.func @transform_3(%arg0: i32, %arg1: i32) -> (i32, i32) {
    %c0_i32 = arith.constant 0 : i32
    %c0_i32_0 = arith.constant 0 : i32
    %c0_i32_1 = arith.constant 0 : i32
    return %c0_i32, %c0_i32_0 : i32, i32
  }
  func.func @transform_4(%arg0: i32, %arg1: i32) -> (i32, i32) {
    %c0_i32 = arith.constant 0 : i32
    %c0_i32_0 = arith.constant 0 : i32
    %c0_i32_1 = arith.constant 0 : i32
    return %c0_i32, %c0_i32_0 : i32, i32
  }
  func.func @transform_5(%arg0: i32, %arg1: i32) -> (i32, i32, i32) {
    %c0_i32 = arith.constant 0 : i32
    %c0_i32_0 = arith.constant 0 : i32
    return %arg0, %arg1, %c0_i32 : i32, i32, i32
  }
}

module attributes {stable_mosaic.version = 11 : i64} {
  func.func @_matmul_bias_res_ln_kernel(%arg0: i32, %arg1: memref<16x32xbf16, #tpu.memory_space<vmem>>, %arg2: memref<32x32xbf16, #tpu.memory_space<vmem>>, %arg3: memref<1x32xf32, #tpu.memory_space<vmem>>, %arg4: memref<16x32xbf16, #tpu.memory_space<vmem>>, %arg5: memref<1x32xf32, #tpu.memory_space<vmem>>, %arg6: memref<1x32xf32, #tpu.memory_space<vmem>>, %arg7: memref<16x32xbf16, #tpu.memory_space<vmem>>) attributes {dimension_semantics = [#tpu.dimension_semantics<parallel>], iteration_bounds = array<i64: 1>, scalar_prefetch = 0 : i64, scratch_operands = 0 : i64, tpu.core_type = #tpu.core_type<tc>, window_params = [{transform_indices = @transform_0, window_bounds = array<i64: 16, 32>}, {pipeline_mode = #tpu.pipeline_mode<synchronous>, transform_indices = @transform_1, window_bounds = array<i64: 32, 32>}, {pipeline_mode = #tpu.pipeline_mode<synchronous>, transform_indices = @transform_2, window_bounds = array<i64: 1, 32>}, {transform_indices = @transform_3, window_bounds = array<i64: 16, 32>}, {pipeline_mode = #tpu.pipeline_mode<synchronous>, transform_indices = @transform_4, window_bounds = array<i64: 1, 32>}, {pipeline_mode = #tpu.pipeline_mode<synchronous>, transform_indices = @transform_5, window_bounds = array<i64: 1, 32>}, {transform_indices = @transform_6, window_bounds = array<i64: 16, 32>}]} {
    %c0 = arith.constant 0 : index
    %c0_0 = arith.constant 0 : index
    %0 = vector.load %arg1[%c0, %c0_0] : memref<16x32xbf16, #tpu.memory_space<vmem>>, vector<16x32xbf16>
    %c0_1 = arith.constant 0 : index
    %c0_2 = arith.constant 0 : index
    %1 = vector.load %arg2[%c0_1, %c0_2] : memref<32x32xbf16, #tpu.memory_space<vmem>>, vector<32x32xbf16>
    %cst = arith.constant dense<0.000000e+00> : vector<16x32xf32>
    %2 = tpu.matmul %0, %1, %cst {dimension_numbers = #tpu.dot_dimension_numbers<[1], [0], [0], [1], [0, 0, 1, 1], [], []>} : vector<16x32xbf16>, vector<32x32xbf16>, vector<16x32xf32> -> vector<16x32xf32>
    %c0_3 = arith.constant 0 : index
    %c0_4 = arith.constant 0 : index
    %3 = vector.load %arg3[%c0_3, %c0_4] : memref<1x32xf32, #tpu.memory_space<vmem>>, vector<1x32xf32>
    %4 = vector.broadcast %3 : vector<1x32xf32> to vector<16x32xf32>
    %5 = arith.addf %2, %4 : vector<16x32xf32>
    %c0_5 = arith.constant 0 : index
    %c0_6 = arith.constant 0 : index
    %6 = vector.load %arg4[%c0_5, %c0_6] : memref<16x32xbf16, #tpu.memory_space<vmem>>, vector<16x32xbf16>
    %7 = arith.extf %6 : vector<16x32xbf16> to vector<16x32xf32>
    %8 = arith.addf %5, %7 : vector<16x32xf32>
    %cst_7 = arith.constant dense<0.000000e+00> : vector<16xf32>
    %9 = vector.multi_reduction <add>, %8, %cst_7 [1] : vector<16x32xf32> to vector<16xf32>
    %10 = vector.shape_cast %9 : vector<16xf32> to vector<16x1xf32>
    %cst_8 = arith.constant 3.200000e+01 : f32
    %11 = vector.broadcast %cst_8 : f32 to vector<16x1xf32>
    %12 = arith.divf %10, %11 : vector<16x1xf32>
    %13 = arith.mulf %8, %8 : vector<16x32xf32>
    %cst_9 = arith.constant dense<0.000000e+00> : vector<16xf32>
    %14 = vector.multi_reduction <add>, %13, %cst_9 [1] : vector<16x32xf32> to vector<16xf32>
    %15 = vector.shape_cast %14 : vector<16xf32> to vector<16x1xf32>
    %cst_10 = arith.constant 3.200000e+01 : f32
    %16 = vector.broadcast %cst_10 : f32 to vector<16x1xf32>
    %17 = arith.divf %15, %16 : vector<16x1xf32>
    %18 = arith.mulf %12, %12 : vector<16x1xf32>
    %19 = arith.subf %17, %18 : vector<16x1xf32>
    %cst_11 = arith.constant 0.000000e+00 : f32
    %20 = vector.broadcast %cst_11 : f32 to vector<16x1xf32>
    %21 = arith.maximumf %19, %20 : vector<16x1xf32>
    %22 = vector.broadcast %12 : vector<16x1xf32> to vector<16x32xf32>
    %23 = arith.subf %8, %22 : vector<16x32xf32>
    %cst_12 = arith.constant 9.99999996E-13 : f32
    %24 = vector.broadcast %cst_12 : f32 to vector<16x1xf32>
    %25 = arith.addf %21, %24 : vector<16x1xf32>
    %26 = math.rsqrt %25 : vector<16x1xf32>
    %27 = vector.broadcast %26 : vector<16x1xf32> to vector<16x32xf32>
    %28 = arith.mulf %23, %27 : vector<16x32xf32>
    %c0_13 = arith.constant 0 : index
    %c0_14 = arith.constant 0 : index
    %29 = vector.load %arg5[%c0_13, %c0_14] : memref<1x32xf32, #tpu.memory_space<vmem>>, vector<1x32xf32>
    %30 = vector.broadcast %29 : vector<1x32xf32> to vector<16x32xf32>
    %31 = arith.mulf %28, %30 : vector<16x32xf32>
    %c0_15 = arith.constant 0 : index
    %c0_16 = arith.constant 0 : index
    %32 = vector.load %arg6[%c0_15, %c0_16] : memref<1x32xf32, #tpu.memory_space<vmem>>, vector<1x32xf32>
    %33 = vector.broadcast %32 : vector<1x32xf32> to vector<16x32xf32>
    %34 = arith.addf %31, %33 : vector<16x32xf32>
    %35 = arith.truncf %34 : vector<16x32xf32> to vector<16x32xbf16>
    %c0_17 = arith.constant 0 : index
    %c0_18 = arith.constant 0 : index
    %36 = vector.load %arg7[%c0_17, %c0_18] : memref<16x32xbf16, #tpu.memory_space<vmem>>, vector<16x32xbf16>
    tpu.vector_store %arg7[%c0_17, %c0_18], %35 {strides = array<i32>} : memref<16x32xbf16, #tpu.memory_space<vmem>>, vector<16x32xbf16>,
    return
  }
  func.func @transform_0(%arg0: i32) -> (i32, i32) {
    %c0_i32 = arith.constant 0 : i32
    %c0_i32_0 = arith.constant 0 : i32
    return %arg0, %c0_i32 : i32, i32
  }
  func.func @transform_1(%arg0: i32) -> (i32, i32) {
    %c0_i32 = arith.constant 0 : i32
    %c0_i32_0 = arith.constant 0 : i32
    %c0_i32_1 = arith.constant 0 : i32
    return %c0_i32, %c0_i32_0 : i32, i32
  }
  func.func @transform_2(%arg0: i32) -> (i32, i32) {
    %c0_i32 = arith.constant 0 : i32
    %c0_i32_0 = arith.constant 0 : i32
    %c0_i32_1 = arith.constant 0 : i32
    return %c0_i32, %c0_i32_0 : i32, i32
  }
  func.func @transform_3(%arg0: i32) -> (i32, i32) {
    %c0_i32 = arith.constant 0 : i32
    %c0_i32_0 = arith.constant 0 : i32
    return %arg0, %c0_i32 : i32, i32
  }
  func.func @transform_4(%arg0: i32) -> (i32, i32) {
    %c0_i32 = arith.constant 0 : i32
    %c0_i32_0 = arith.constant 0 : i32
    %c0_i32_1 = arith.constant 0 : i32
    return %c0_i32, %c0_i32_0 : i32, i32
  }
  func.func @transform_5(%arg0: i32) -> (i32, i32) {
    %c0_i32 = arith.constant 0 : i32
    %c0_i32_0 = arith.constant 0 : i32
    %c0_i32_1 = arith.constant 0 : i32
    return %c0_i32, %c0_i32_0 : i32, i32
  }
  func.func @transform_6(%arg0: i32) -> (i32, i32) {
    %c0_i32 = arith.constant 0 : i32
    %c0_i32_0 = arith.constant 0 : i32
    return %arg0, %c0_i32 : i32, i32
  }
}

module attributes {stable_mosaic.version = 11 : i64} {
  func.func @_matmul_bias_act_kernel(%arg0: i32, %arg1: memref<16x32xbf16, #tpu.memory_space<vmem>>, %arg2: memref<32x64xbf16, #tpu.memory_space<vmem>>, %arg3: memref<1x64xf32, #tpu.memory_space<vmem>>, %arg4: memref<16x64xbf16, #tpu.memory_space<vmem>>) attributes {dimension_semantics = [#tpu.dimension_semantics<parallel>], iteration_bounds = array<i64: 1>, scalar_prefetch = 0 : i64, scratch_operands = 0 : i64, tpu.core_type = #tpu.core_type<tc>, window_params = [{transform_indices = @transform_0, window_bounds = array<i64: 16, 32>}, {pipeline_mode = #tpu.pipeline_mode<synchronous>, transform_indices = @transform_1, window_bounds = array<i64: 32, 64>}, {pipeline_mode = #tpu.pipeline_mode<synchronous>, transform_indices = @transform_2, window_bounds = array<i64: 1, 64>}, {transform_indices = @transform_3, window_bounds = array<i64: 16, 64>}]} {
    %c0 = arith.constant 0 : index
    %c0_0 = arith.constant 0 : index
    %0 = vector.load %arg1[%c0, %c0_0] : memref<16x32xbf16, #tpu.memory_space<vmem>>, vector<16x32xbf16>
    %c0_1 = arith.constant 0 : index
    %c0_2 = arith.constant 0 : index
    %1 = vector.load %arg2[%c0_1, %c0_2] : memref<32x64xbf16, #tpu.memory_space<vmem>>, vector<32x64xbf16>
    %cst = arith.constant dense<0.000000e+00> : vector<16x64xf32>
    %2 = tpu.matmul %0, %1, %cst {dimension_numbers = #tpu.dot_dimension_numbers<[1], [0], [0], [1], [0, 0, 1, 1], [], []>} : vector<16x32xbf16>, vector<32x64xbf16>, vector<16x64xf32> -> vector<16x64xf32>
    %c0_3 = arith.constant 0 : index
    %c0_4 = arith.constant 0 : index
    %3 = vector.load %arg3[%c0_3, %c0_4] : memref<1x64xf32, #tpu.memory_space<vmem>>, vector<1x64xf32>
    %4 = vector.broadcast %3 : vector<1x64xf32> to vector<16x64xf32>
    %5 = arith.addf %2, %4 : vector<16x64xf32>
    %cst_5 = arith.constant 5.000000e-01 : f32
    %6 = vector.broadcast %cst_5 : f32 to vector<16x64xf32>
    %7 = arith.mulf %6, %5 : vector<16x64xf32>
    %cst_6 = arith.constant 4.471500e-02 : f32
    %8 = vector.broadcast %cst_6 : f32 to vector<16x64xf32>
    %9 = arith.mulf %8, %5 : vector<16x64xf32>
    %10 = arith.mulf %9, %5 : vector<16x64xf32>
    %11 = arith.mulf %10, %5 : vector<16x64xf32>
    %12 = arith.addf %5, %11 : vector<16x64xf32>
    %cst_7 = arith.constant 0.797884583 : f32
    %13 = vector.broadcast %cst_7 : f32 to vector<16x64xf32>
    %14 = arith.mulf %13, %12 : vector<16x64xf32>
    %15 = math.tanh %14 : vector<16x64xf32>
    %cst_8 = arith.constant 1.000000e+00 : f32
    %16 = vector.broadcast %cst_8 : f32 to vector<16x64xf32>
    %17 = arith.addf %16, %15 : vector<16x64xf32>
    %18 = arith.mulf %7, %17 : vector<16x64xf32>
    %19 = arith.truncf %18 : vector<16x64xf32> to vector<16x64xbf16>
    %c0_9 = arith.constant 0 : index
    %c0_10 = arith.constant 0 : index
    %20 = vector.load %arg4[%c0_9, %c0_10] : memref<16x64xbf16, #tpu.memory_space<vmem>>, vector<16x64xbf16>
    tpu.vector_store %arg4[%c0_9, %c0_10], %19 {strides = array<i32>} : memref<16x64xbf16, #tpu.memory_space<vmem>>, vector<16x64xbf16>,
    return
  }
  func.func @transform_0(%arg0: i32) -> (i32, i32) {
    %c0_i32 = arith.constant 0 : i32
    %c0_i32_0 = arith.constant 0 : i32
    return %arg0, %c0_i32 : i32, i32
  }
  func.func @transform_1(%arg0: i32) -> (i32, i32) {
    %c0_i32 = arith.constant 0 : i32
    %c0_i32_0 = arith.constant 0 : i32
    %c0_i32_1 = arith.constant 0 : i32
    return %c0_i32, %c0_i32_0 : i32, i32
  }
  func.func @transform_2(%arg0: i32) -> (i32, i32) {
    %c0_i32 = arith.constant 0 : i32
    %c0_i32_0 = arith.constant 0 : i32
    %c0_i32_1 = arith.constant 0 : i32
    return %c0_i32, %c0_i32_0 : i32, i32
  }
  func.func @transform_3(%arg0: i32) -> (i32, i32) {
    %c0_i32 = arith.constant 0 : i32
    %c0_i32_0 = arith.constant 0 : i32
    return %arg0, %c0_i32 : i32, i32
  }
}

module attributes {stable_mosaic.version = 11 : i64} {
  func.func @_matmul_bias_res_ln_kernel(%arg0: i32, %arg1: memref<16x64xbf16, #tpu.memory_space<vmem>>, %arg2: memref<64x32xbf16, #tpu.memory_space<vmem>>, %arg3: memref<1x32xf32, #tpu.memory_space<vmem>>, %arg4: memref<16x32xbf16, #tpu.memory_space<vmem>>, %arg5: memref<1x32xf32, #tpu.memory_space<vmem>>, %arg6: memref<1x32xf32, #tpu.memory_space<vmem>>, %arg7: memref<16x32xbf16, #tpu.memory_space<vmem>>) attributes {dimension_semantics = [#tpu.dimension_semantics<parallel>], iteration_bounds = array<i64: 1>, scalar_prefetch = 0 : i64, scratch_operands = 0 : i64, tpu.core_type = #tpu.core_type<tc>, window_params = [{transform_indices = @transform_0, window_bounds = array<i64: 16, 64>}, {pipeline_mode = #tpu.pipeline_mode<synchronous>, transform_indices = @transform_1, window_bounds = array<i64: 64, 32>}, {pipeline_mode = #tpu.pipeline_mode<synchronous>, transform_indices = @transform_2, window_bounds = array<i64: 1, 32>}, {transform_indices = @transform_3, window_bounds = array<i64: 16, 32>}, {pipeline_mode = #tpu.pipeline_mode<synchronous>, transform_indices = @transform_4, window_bounds = array<i64: 1, 32>}, {pipeline_mode = #tpu.pipeline_mode<synchronous>, transform_indices = @transform_5, window_bounds = array<i64: 1, 32>}, {transform_indices = @transform_6, window_bounds = array<i64: 16, 32>}]} {
    %c0 = arith.constant 0 : index
    %c0_0 = arith.constant 0 : index
    %0 = vector.load %arg1[%c0, %c0_0] : memref<16x64xbf16, #tpu.memory_space<vmem>>, vector<16x64xbf16>
    %c0_1 = arith.constant 0 : index
    %c0_2 = arith.constant 0 : index
    %1 = vector.load %arg2[%c0_1, %c0_2] : memref<64x32xbf16, #tpu.memory_space<vmem>>, vector<64x32xbf16>
    %cst = arith.constant dense<0.000000e+00> : vector<16x32xf32>
    %2 = tpu.matmul %0, %1, %cst {dimension_numbers = #tpu.dot_dimension_numbers<[1], [0], [0], [1], [0, 0, 1, 1], [], []>} : vector<16x64xbf16>, vector<64x32xbf16>, vector<16x32xf32> -> vector<16x32xf32>
    %c0_3 = arith.constant 0 : index
    %c0_4 = arith.constant 0 : index
    %3 = vector.load %arg3[%c0_3, %c0_4] : memref<1x32xf32, #tpu.memory_space<vmem>>, vector<1x32xf32>
    %4 = vector.broadcast %3 : vector<1x32xf32> to vector<16x32xf32>
    %5 = arith.addf %2, %4 : vector<16x32xf32>
    %c0_5 = arith.constant 0 : index
    %c0_6 = arith.constant 0 : index
    %6 = vector.load %arg4[%c0_5, %c0_6] : memref<16x32xbf16, #tpu.memory_space<vmem>>, vector<16x32xbf16>
    %7 = arith.extf %6 : vector<16x32xbf16> to vector<16x32xf32>
    %8 = arith.addf %5, %7 : vector<16x32xf32>
    %cst_7 = arith.constant dense<0.000000e+00> : vector<16xf32>
    %9 = vector.multi_reduction <add>, %8, %cst_7 [1] : vector<16x32xf32> to vector<16xf32>
    %10 = vector.shape_cast %9 : vector<16xf32> to vector<16x1xf32>
    %cst_8 = arith.constant 3.200000e+01 : f32
    %11 = vector.broadcast %cst_8 : f32 to vector<16x1xf32>
    %12 = arith.divf %10, %11 : vector<16x1xf32>
    %13 = arith.mulf %8, %8 : vector<16x32xf32>
    %cst_9 = arith.constant dense<0.000000e+00> : vector<16xf32>
    %14 = vector.multi_reduction <add>, %13, %cst_9 [1] : vector<16x32xf32> to vector<16xf32>
    %15 = vector.shape_cast %14 : vector<16xf32> to vector<16x1xf32>
    %cst_10 = arith.constant 3.200000e+01 : f32
    %16 = vector.broadcast %cst_10 : f32 to vector<16x1xf32>
    %17 = arith.divf %15, %16 : vector<16x1xf32>
    %18 = arith.mulf %12, %12 : vector<16x1xf32>
    %19 = arith.subf %17, %18 : vector<16x1xf32>
    %cst_11 = arith.constant 0.000000e+00 : f32
    %20 = vector.broadcast %cst_11 : f32 to vector<16x1xf32>
    %21 = arith.maximumf %19, %20 : vector<16x1xf32>
    %22 = vector.broadcast %12 : vector<16x1xf32> to vector<16x32xf32>
    %23 = arith.subf %8, %22 : vector<16x32xf32>
    %cst_12 = arith.constant 9.99999996E-13 : f32
    %24 = vector.broadcast %cst_12 : f32 to vector<16x1xf32>
    %25 = arith.addf %21, %24 : vector<16x1xf32>
    %26 = math.rsqrt %25 : vector<16x1xf32>
    %27 = vector.broadcast %26 : vector<16x1xf32> to vector<16x32xf32>
    %28 = arith.mulf %23, %27 : vector<16x32xf32>
    %c0_13 = arith.constant 0 : index
    %c0_14 = arith.constant 0 : index
    %29 = vector.load %arg5[%c0_13, %c0_14] : memref<1x32xf32, #tpu.memory_space<vmem>>, vector<1x32xf32>
    %30 = vector.broadcast %29 : vector<1x32xf32> to vector<16x32xf32>
    %31 = arith.mulf %28, %30 : vector<16x32xf32>
    %c0_15 = arith.constant 0 : index
    %c0_16 = arith.constant 0 : index
    %32 = vector.load %arg6[%c0_15, %c0_16] : memref<1x32xf32, #tpu.memory_space<vmem>>, vector<1x32xf32>
    %33 = vector.broadcast %32 : vector<1x32xf32> to vector<16x32xf32>
    %34 = arith.addf %31, %33 : vector<16x32xf32>
    %35 = arith.truncf %34 : vector<16x32xf32> to vector<16x32xbf16>
    %c0_17 = arith.constant 0 : index
    %c0_18 = arith.constant 0 : index
    %36 = vector.load %arg7[%c0_17, %c0_18] : memref<16x32xbf16, #tpu.memory_space<vmem>>, vector<16x32xbf16>
    tpu.vector_store %arg7[%c0_17, %c0_18], %35 {strides = array<i32>} : memref<16x32xbf16, #tpu.memory_space<vmem>>, vector<16x32xbf16>,
    return
  }
  func.func @transform_0(%arg0: i32) -> (i32, i32) {
    %c0_i32 = arith.constant 0 : i32
    %c0_i32_0 = arith.constant 0 : i32
    return %arg0, %c0_i32 : i32, i32
  }
  func.func @transform_1(%arg0: i32) -> (i32, i32) {
    %c0_i32 = arith.constant 0 : i32
    %c0_i32_0 = arith.constant 0 : i32
    %c0_i32_1 = arith.constant 0 : i32
    return %c0_i32, %c0_i32_0 : i32, i32
  }
  func.func @transform_2(%arg0: i32) -> (i32, i32) {
    %c0_i32 = arith.constant 0 : i32
    %c0_i32_0 = arith.constant 0 : i32
    %c0_i32_1 = arith.constant 0 : i32
    return %c0_i32, %c0_i32_0 : i32, i32
  }
  func.func @transform_3(%arg0: i32) -> (i32, i32) {
    %c0_i32 = arith.constant 0 : i32
    %c0_i32_0 = arith.constant 0 : i32
    return %arg0, %c0_i32 : i32, i32
  }
  func.func @transform_4(%arg0: i32) -> (i32, i32) {
    %c0_i32 = arith.constant 0 : i32
    %c0_i32_0 = arith.constant 0 : i32
    %c0_i32_1 = arith.constant 0 : i32
    return %c0_i32, %c0_i32_0 : i32, i32
  }
  func.func @transform_5(%arg0: i32) -> (i32, i32) {
    %c0_i32 = arith.constant 0 : i32
    %c0_i32_0 = arith.constant 0 : i32
    %c0_i32_1 = arith.constant 0 : i32
    return %c0_i32, %c0_i32_0 : i32, i32
  }
  func.func @transform_6(%arg0: i32) -> (i32, i32) {
    %c0_i32 = arith.constant 0 : i32
    %c0_i32_0 = arith.constant 0 : i32
    return %arg0, %c0_i32 : i32, i32
  }
}

module attributes {stable_mosaic.version = 11 : i64} {
  func.func @_matmul_bias_act_kernel(%arg0: i32, %arg1: memref<2x32xbf16, #tpu.memory_space<vmem>>, %arg2: memref<32x32xbf16, #tpu.memory_space<vmem>>, %arg3: memref<1x32xf32, #tpu.memory_space<vmem>>, %arg4: memref<2x32xf32, #tpu.memory_space<vmem>>) attributes {dimension_semantics = [#tpu.dimension_semantics<parallel>], iteration_bounds = array<i64: 1>, scalar_prefetch = 0 : i64, scratch_operands = 0 : i64, tpu.core_type = #tpu.core_type<tc>, window_params = [{transform_indices = @transform_0, window_bounds = array<i64: 2, 32>}, {pipeline_mode = #tpu.pipeline_mode<synchronous>, transform_indices = @transform_1, window_bounds = array<i64: 32, 32>}, {pipeline_mode = #tpu.pipeline_mode<synchronous>, transform_indices = @transform_2, window_bounds = array<i64: 1, 32>}, {transform_indices = @transform_3, window_bounds = array<i64: 2, 32>}]} {
    %c0 = arith.constant 0 : index
    %c0_0 = arith.constant 0 : index
    %0 = vector.load %arg1[%c0, %c0_0] : memref<2x32xbf16, #tpu.memory_space<vmem>>, vector<2x32xbf16>
    %c0_1 = arith.constant 0 : index
    %c0_2 = arith.constant 0 : index
    %1 = vector.load %arg2[%c0_1, %c0_2] : memref<32x32xbf16, #tpu.memory_space<vmem>>, vector<32x32xbf16>
    %cst = arith.constant dense<0.000000e+00> : vector<2x32xf32>
    %2 = tpu.matmul %0, %1, %cst {dimension_numbers = #tpu.dot_dimension_numbers<[1], [0], [0], [1], [0, 0, 1, 1], [], []>} : vector<2x32xbf16>, vector<32x32xbf16>, vector<2x32xf32> -> vector<2x32xf32>
    %c0_3 = arith.constant 0 : index
    %c0_4 = arith.constant 0 : index
    %3 = vector.load %arg3[%c0_3, %c0_4] : memref<1x32xf32, #tpu.memory_space<vmem>>, vector<1x32xf32>
    %4 = vector.broadcast %3 : vector<1x32xf32> to vector<2x32xf32>
    %5 = arith.addf %2, %4 : vector<2x32xf32>
    %6 = math.tanh %5 : vector<2x32xf32>
    %c0_5 = arith.constant 0 : index
    %c0_6 = arith.constant 0 : index
    %7 = vector.load %arg4[%c0_5, %c0_6] : memref<2x32xf32, #tpu.memory_space<vmem>>, vector<2x32xf32>
    tpu.vector_store %arg4[%c0_5, %c0_6], %6 {strides = array<i32>} : memref<2x32xf32, #tpu.memory_space<vmem>>, vector<2x32xf32>,
    return
  }
  func.func @transform_0(%arg0: i32) -> (i32, i32) {
    %c0_i32 = arith.constant 0 : i32
    %c0_i32_0 = arith.constant 0 : i32
    return %arg0, %c0_i32 : i32, i32
  }
  func.func @transform_1(%arg0: i32) -> (i32, i32) {
    %c0_i32 = arith.constant 0 : i32
    %c0_i32_0 = arith.constant 0 : i32
    %c0_i32_1 = arith.constant 0 : i32
    return %c0_i32, %c0_i32_0 : i32, i32
  }
  func.func @transform_2(%arg0: i32) -> (i32, i32) {
    %c0_i32 = arith.constant 0 : i32
    %c0_i32_0 = arith.constant 0 : i32
    %c0_i32_1 = arith.constant 0 : i32
    return %c0_i32, %c0_i32_0 : i32, i32
  }
  func.func @transform_3(%arg0: i32) -> (i32, i32) {
    %c0_i32 = arith.constant 0 : i32
    %c0_i32_0 = arith.constant 0 : i32
    return %arg0, %c0_i32 : i32, i32
  }
}

</mosaic_0001>

<bundles_post_ra>
// kernel: _lambda_.12
= control target key start
LH: loop header
LB: loop body
LE: loop exit
PB: predicated region body
PF: predicated region fallthrough
CT: control target
= control target key end

     0   :  { %s499_s18 = smov 0   ;;  %s501_s19 = smov 0   ;;  %s551_s0 = inlined_call_operand.vmem [shape: bf16[2,8,32], index: 0, kind: input, shape index: {}]   ;;  %s552_s1 = inlined_call_operand.vmem [shape: bf16[8,32], index: 1, kind: input, shape index: {}]   ;;  %s553_s2 = inlined_call_operand.vmem [shape: bf16[1,32], index: 2, kind: input, shape index: {}]   ;;  %s554_s3 = inlined_call_operand.vmem [shape: f32[1,32], index: 3, kind: input, shape index: {}]   ;;  %s555_s4 = inlined_call_operand.vmem [shape: f32[1,32], index: 4, kind: input, shape index: {}]   ;;  %s556_s5 = inlined_call_operand.vmem [shape: bf16[2,8,32], index: 5, kind: output, shape index: {}]  }
   0x1   :  { %s503_s20 = smov 0  }
   0x2 LB: > { %s27_s21 = sadd.s32 1, %s463_s19  ;;  %p412_p0 = scmp.ge.s32.totalorder %s467_s20, 1  ;;  %s467_s20 = sphi %s503_s20, %s15_s20   ;;  %s463_s19 = sphi %s501_s19, %s558_s19   ;;  %s459_s18 = sphi %s499_s18, %s557_s18  }
   0x3   : > { %p29_p1 = scmp.ge.s32.totalorder %s27_s21, 2  ;;  %p214_p2 = scmp.lt.s32.totalorder %s467_s20, 3 }
   0x5   : > { %s560_s21 = smov (%p29_p1, %s27_s21), 0  ;;  %p215_p3 = pnand %p412_p0, %p214_p2 }
   0x6   : > { %p250_p4 = scmp.lt.s32.totalorder (!%p215_p3), %s459_s18, 1 }
   0x7   : > { %218 = sbr.rel (%p215_p3) target bundleno = 196 (0xc4), region = 40 }
   0xc   : > { %v273_v0 = vld [vmem:[%s553_s2] sm:$0x1]  ;;  %v275_v1 = vlaneseq  ;;  %s562_s18 = smov (!%p250_p4, %s459_s18), 1  ;;  %vm280_vm0 = vcmask 261120   ;;  %vm315_vm1 = vcmask 257024  }
   0xd   : > { %v270_v2 = vld [vmem:[%s552_s1] sm:$0xf]  ;;  %v274_v4 = vunpack.c.l.bf16 %v273_v0  ;;  %s413_s26 = sshll.u32 %s562_s18, 2 }
   0xe   : > { %v276_v3 = vshrl.u32 %v275_v1, 7  ;;  %s256_s29 = scalar_lea.vmem %s551_s0, %s413_s26  ;;  %v271_v6 = vunpack.c.l.bf16 %v270_v2  ;;  %v415_v25 = vld [vmem:[%s554_s3] ss:$0 sm:$0xff]  ;;  %s267_s11 = scalar_lea.vmem %s556_s5, %s413_s26 }
   0xf   : > { %v268_v7 = vld [vmem:[%s256_s29] sm:$0xf] }
  0x10   : > { %v277_v5 = vsub.s32 0, %v276_v3  ;;  %v269_v8 = vunpack.c.l.bf16 %v268_v7  ;;  %v416_v27 = vld [vmem:[%s555_s4] ss:$0 sm:$0xff] }
  0x12   : > { %v278_v9 = vrot.slane %v274_v4, %v277_v5  ;;  %v272_v10 = vadd.f32 %v271_v6, %v269_v8 }
  0x14   : > { %v279_v11 = vadd.f32 %v278_v9, %v272_v10 }
  0x16   : > { %v281_v12 = vsel %vm280_vm0, %v279_v11, 0.0  ;;  %v286_v13 = vmul.f32 %v279_v11, %v279_v11 }
  0x17   : > { %282 = vadd.xlane.f32.xlu0 %v281_v12 }
  0x18   : > { %v287_v14 = vsel %vm280_vm0, %v286_v13, 0.0 }
  0x1b   : > { %288 = vadd.xlane.f32.xlu0 %v287_v14 }
  0xa0   : > { %v283_v15 = vpop.xlane.xlu0 %282 }
  0xa1   : > { %v285_v16 = vmul.f32 0.03125, %v283_v15 }
  0xa3   : > { %v291_v18 = vmul.f32 %v285_v16, %v285_v16  ;;  %v294_v23 = vsub.f32 %v279_v11, %v285_v16 }
  0xa4   : > { %v289_v17 = vpop.xlane.xlu0 %288 }
  0xa5   : > { %v290_v19 = vmul.f32 0.03125, %v289_v17 }
  0xa7   : > { %v292_v20 = vsub.f32 %v290_v19, %v291_v18 }
  0xa9   : > { %v293_v21 = vmax.f32 %v292_v20, 0.0 }
  0xab   : > { %v295_v22 = vadd.f32 1e-12, %v293_v21 }
  0xad   : > { %443 = vrsqrt.f32 %v295_v22 }
  0xba   : > { %v444_v24 = vpop.eup %443 }
  0xbb   : > { %v297_v26 = vmul.f32 %v444_v24, %v294_v23 }
  0xbd   : > { %v305_v28 = vmul.f32 %v415_v25, %v297_v26 }
  0xbf   : > { %v313_v29 = vadd.f32 %v416_v27, %v305_v28 }
  0xc1   : > { %v314_v30 = vpack.c.bf16 %v313_v29, %v313_v29 }
  0xc3   : > { %316 = vst.msk [vmem:[%s267_s11] sm:$0xf] %vm315_vm1, %v314_v30 }
  0xc4 PF: > { %s15_s20 = sadd.s32 1, %s467_s20   ;;  %s557_s18 = smov %s463_s19 }
  0xc5   : > { %p12_p5 = scmp.ge.s32.totalorder %s15_s20, 4   ;;  %s558_s19 = smov %s560_s21 }
  0xc7   :  { %14 = sbr.rel (!%p12_p5) target bundleno = 2 (0x2), region = 73 }

// kernel: _lambda_.13
= control target key start
LH: loop header
LB: loop body
LE: loop exit
PB: predicated region body
PF: predicated region fallthrough
CT: control target
= control target key end

     0   :  { %v130_v0 = vmov 0.0   ;;  %vm131_vm0 = vmmov 0   ;;  %vm45_vm1 = vcmask 261120   ;;  %vm98_vm2 = vcmask 781312   ;;  %s170_s1 = inlined_call_operand.vmem [shape: bf16[32,96], index: 1, kind: input, shape index: {}]   ;;  %s171_s0 = inlined_call_operand.vmem [shape: bf16[16,32], index: 0, kind: input, shape index: {}]   ;;  %s172_s2 = inlined_call_operand.vmem [shape: f32[1,96], index: 2, kind: input, shape index: {}]   ;;  %s173_s3 = inlined_call_operand.vmem [shape: bf16[16,96], index: 3, kind: output, shape index: {}]  }
   0x1   :  { %117 = vmatprep.subr.bf16.mxu0 %v130_v0  ;;  %v127_v1 = vld [vmem:[%s170_s1 + $0x8] sm:$0xff]   ;;  %121 = vmatprep.mubr.msk.bf16.mxu0 %vm131_vm0, %v130_v0  ;;  %v128_v2 = vld [vmem:[%s170_s1] sm:$0xff]  }
   0x2   :  { %118 = vmatpush3.bf16.msra.mxu0 %v127_v1  ;;  %v129_v3 = vld [vmem:[%s171_s0] sm:$0xff]  }
   0x3   :  { %119 = vmatprep.subr.bf16.mxu0 %v130_v0  ;;  %v105_v4 = vld [vmem:[%s172_s2] ss:$0 sm:$0xff] }
   0x6   :  { %120 = vmatpush3.bf16.msra.mxu0 %v128_v2 }
   0x9   :  { %122 = vmatmul.mubr.msk.bf16.vlgmr.msra.gmra.mxu0 %vm45_vm1, %v129_v3 }
  0xc9   :  { %v83_v5 = vpop.f32.mrf.mxu0 }
  0xca   :  { %v84_v6 = vadd.f32 %v105_v4, %v83_v5 }
  0xcb   :  { %v123_v7 = vpop.f32.mrf.mxu0 }
  0xcc   :  { %v112_v8 = vpack.c.bf16 %v84_v6, %v84_v6 }
  0xcd   :  { %v86_v9 = vpop.f32.mrf.mxu0 }
  0xce   :  { %99 = vst.msk [vmem:[%s173_s3] sm:$0xf] %vm98_vm2, %v112_v8  ;;  %v87_v10 = vadd.f32 %v105_v4, %v86_v9 }
  0xcf   :  { %v124_v11 = vpop.f32.mrf.mxu0 }
  0xd0   :  { %v113_v12 = vpack.c.bf16 %v87_v10, %v87_v10 }
  0xd2   :  { %100 = vst.msk [vmem:[%s173_s3 + $0x4] sm:$0xf] %vm98_vm2, %v113_v12 }

// kernel: _lambda_.14
= control target key start
LH: loop header
LB: loop body
LE: loop exit
PB: predicated region body
PF: predicated region fallthrough
CT: control target
= control target key end

     0   :  { %s648_s9 = smov 0   ;;  %s650_s10 = smov 0   ;;  %s712_s0 = inlined_call_operand.vmem [shape: bf16[2,8,96], index: 0, kind: input, shape index: {}, may-alias: {0,1}]   ;;  %s713_s1 = inlined_call_operand.vmem [shape: bf16[2,8,96], index: 1, kind: input, shape index: {}, may-alias: {0,1}]   ;;  %s714_s2 = inlined_call_operand.vmem [shape: bf16[2,8,32], index: 2, kind: output, shape index: {}]  }
   0x1   :  { %s652_s11 = smov 0  }
   0x2 LB: > { %s24_s12 = sadd.s32 1, %s619_s10  ;;  %p515_p0 = scmp.ge.s32.totalorder %s623_s11, 1  ;;  %s623_s11 = sphi %s652_s11, %s12_s11   ;;  %s619_s10 = sphi %s650_s10, %s716_s10   ;;  %s615_s9 = sphi %s648_s9, %s715_s9  }
   0x3   : > { %p26_p1 = scmp.ge.s32.totalorder %s24_s12, 2  ;;  %p139_p2 = scmp.lt.s32.totalorder %s623_s11, 3 }
   0x5   : > { %s718_s12 = smov (%p26_p1, %s24_s12), 0  ;;  %p140_p3 = pnand %p515_p0, %p139_p2 }
   0x6   : > { %p169_p4 = scmp.lt.s32.totalorder (!%p140_p3), %s615_s9, 1  ;;  %s627_s17 = smov (!%p140_p3), 96  }
   0x7   : > { %143 = sbr.rel (%p140_p3) target bundleno = 1473 (0x5c1), region = 28  ;;  %s628_s21 = smov (!%p140_p3), 64  }
   0x8   : > { %s629_s22 = smov (!%p140_p3), 80   ;;  %s630_s23 = smov (!%p140_p3), 112  }
   0x9   : > { %s631_s24 = smov (!%p140_p3), 48   ;;  %s632_s25 = smov (!%p140_p3), 16  }
   0xc   : > { %v625_v0 = vmov 0.0   ;;  %vm626_vm0 = vmmov 0   ;;  %s720_s9 = smov (!%p169_p4, %s615_s9), 1  ;;  %vm195_vm1 = vcmask 130048   ;;  %vm242_vm2 = vcmask 64512  }
   0xd   : > { %535 = vmatprep.subr.bf16.mxu0 %v625_v0  ;;  %537 = vmatprep.mubr.msk.bf16.mxu0 %vm626_vm0, %v625_v0  ;;  %s668_s13 = sshll.u32 %s720_s9, 2  ;;  %vm260_vm3 = vcmask 1043456   ;;  %vm423_vm4 = vcmask 257024  }
   0xe   : > { %541 = vmatprep.subr.bf16.mxu1 %v625_v0  ;;  %543 = vmatprep.mubr.msk.bf16.mxu1 %vm626_vm0, %v625_v0  ;;  %s179_s16 = scalar_lea.vmem %s713_s1, %s668_s13  ;;  %s175_s20 = scalar_lea.vmem %s712_s0, %s668_s13 }
   0xf   : > { %v674_v1 = vld [vmem:[%s179_s16] ss:$0 sps:$4 sm:$0xff]   ;;  %s186_s28 = scalar_lea.vmem %s714_s2, %s668_s13 }
  0x10   : > { %193 = vrot.lane.b32.xlu0 %v674_v1, %s627_s17  ;;  %v188_v4 = vld [vmem:[%s175_s20] sm:$0xf]  ;;  %255 = vrot.lane.b32.xlu1 %v674_v1, %s628_s21 }
  0x11   : > { %v522_v17 = vcombine.low %v188_v4, %v188_v4 }
  0x82   : > { %v194_v2 = vpop.permute.xlu0 %193  ;;  %v256_v10 = vpop.permute.xlu1 %255 }
  0x83   : > { %v200_v3 = vsel %vm195_vm1, %v194_v2, 0  ;;  %v262_v11 = vsel %vm260_vm3, %v256_v10, 0 }
  0x84   : > { %536 = vmatpush3.bf16.xpose.msra.mxu0 %v200_v3  ;;  %542 = vmatpush3.bf16.msra.mxu1 %v262_v11 }
  0x85   : > { %553 = vmatprep.subr.bf16.mxu0 %v625_v0  ;;  %547 = vmatprep.subr.bf16.mxu1 %v625_v0 }
  0x8b   : > { %538 = vmatmul.mubr.msk.bf16.vlgmr.msra.gmra.mxu0 %vm195_vm1, %v188_v4 }
  0x8c   : > { %555 = vmatprep.mubr.msk.bf16.mxu0 %vm626_vm0, %v625_v0 }
 0x14b   : > { %v236_v5 = vpop.f32.mrf.mxu0 }
 0x14c   : > { %v243_v6 = vsel %vm242_vm2, %v236_v5, -inf }
 0x14d   : > { %244 = vmax.xlane.f32.xlu0 %v243_v6  ;;  %v539_v7 = vpop.f32.mrf.mxu0 }
 0x14f   : > { %v239_v8 = vpop.f32.mrf.mxu0 }
 0x151   : > { %v540_v9 = vpop.f32.mrf.mxu0 }
 0x1d6   : > { %v245_v12 = vpop.xlane.xlu0 %244 }
 0x1d7   : > { %v246_v13 = vsub.f32 %v236_v5, %v245_v12 }
 0x1d9   : > { %v247_v14 = vmul.f32 1.442695, %v246_v13 }
 0x1db   : > { %593 = vpow2.f32 %v247_v14 }
 0x1e8   : > { %v594_v15 = vpop.eup %593 }
 0x1e9   : > { %v249_v16 = vsel %vm242_vm2, %v594_v15, 0.0 }
 0x1ea   : > { %250 = vadd.xlane.f32.xlu1 %v249_v16 }
 0x1fb   : > { %309 = vrot.lane.b32.xlu1 %v674_v1, %s629_s22 }
 0x1ff   : > { %307 = vrot.lane.b32.xlu1 %v522_v17, %s630_s23 }
 0x273   : > { %v251_v18 = vpop.xlane.xlu1 %250 }
 0x274   : > { %595 = vrcp.f32 %v251_v18 }
 0x277   : > { %v310_v20 = vpop.permute.xlu1 %309 }
 0x278   : > { %v315_v22 = vsel %vm195_vm1, %v310_v20, 0 }
 0x27b   : > { %v308_v24 = vpop.permute.xlu1 %307 }
 0x281   : > { %v596_v19 = vpop.eup %595 }
 0x282   : > { %v253_v21 = vmul.f32 %v596_v19, %v594_v15 }
 0x284   : > { %v254_v23 = vpack.c.bf16 %v253_v21, %v253_v21 }
 0x286   : > { %544 = vmatmul.mubr.msk.bf16.vlgmr.msra.gmra.mxu1 %vm242_vm2, %v254_v23 }
 0x287   : > { %548 = vmatpush3.bf16.xpose.msra.mxu1 %v315_v22  ;;  %549 = vmatprep.mubr.msk.bf16.mxu1 %vm626_vm0, %v625_v0 }
 0x28e   : > { %550 = vmatmul.mubr.msk.bf16.vlgmr.msra.gmra.mxu1 %vm195_vm1, %v308_v24 }
 0x346   : > { %v298_v25 = vpop.f32.mrf.mxu1 }
 0x348   : > { %v545_v26 = vpop.f32.mrf.mxu1 }
 0x34a   : > { %v301_v27 = vpop.f32.mrf.mxu1 }
 0x34c   : > { %v546_v28 = vpop.f32.mrf.mxu1 }
 0x34e   : > { %v351_v29 = vpop.f32.mrf.mxu1 }
 0x34f   : > { %v357_v30 = vsel %vm242_vm2, %v351_v29, -inf }
 0x350   : > { %358 = vmax.xlane.f32.xlu1 %v357_v30  ;;  %v551_v31 = vpop.f32.mrf.mxu1 }
 0x352   : > { %v354_v32 = vpop.f32.mrf.mxu1 }
 0x354   : > { %v552_v33 = vpop.f32.mrf.mxu1 }
 0x3d9   : > { %v359_v34 = vpop.xlane.xlu1 %358 }
 0x3da   : > { %v360_v35 = vsub.f32 %v351_v29, %v359_v34 }
 0x3dc   : > { %v361_v36 = vmul.f32 1.442695, %v360_v35 }
 0x3de   : > { %597 = vpow2.f32 %v361_v36 }
 0x3eb   : > { %v598_v37 = vpop.eup %597 }
 0x3ec   : > { %v363_v38 = vsel %vm242_vm2, %v598_v37, 0.0 }
 0x3ed   : > { %364 = vadd.xlane.f32.xlu0 %v363_v38 }
 0x403   : > { %369 = vrot.lane.b32.xlu0 %v674_v1, %s631_s24 }
 0x476   : > { %v365_v39 = vpop.xlane.xlu0 %364 }
 0x477   : > { %599 = vrcp.f32 %v365_v39 }
 0x47a   : > { %v370_v40 = vpop.permute.xlu0 %369 }
 0x47b   : > { %v375_v41 = vsel %vm260_vm3, %v370_v40, 0 }
 0x47c   : > { %554 = vmatpush3.bf16.msra.mxu0 %v375_v41 }
 0x484   : > { %v600_v42 = vpop.eup %599 }
 0x485   : > { %v367_v43 = vmul.f32 %v600_v42, %v598_v37 }
 0x487   : > { %v368_v44 = vpack.c.bf16 %v367_v43, %v367_v43 }
 0x489   : > { %556 = vmatmul.mubr.msk.bf16.vlgmr.msra.gmra.mxu0 %vm242_vm2, %v368_v44 }
 0x549   : > { %v411_v45 = vpop.f32.mrf.mxu0 }
 0x54a   : > { %418 = vrot.lane.b32.xlu0 %v411_v45, %s632_s25 }
 0x54b   : > { %v557_v46 = vpop.f32.mrf.mxu0 }
 0x54d   : > { %v414_v47 = vpop.f32.mrf.mxu0 }
 0x54f   : > { %v558_v48 = vpop.f32.mrf.mxu0 }
 0x5bc   : > { %v419_v49 = vpop.permute.xlu0 %418 }
 0x5bd   : > { %v421_v50 = vsel %vm195_vm1, %v298_v25, %v419_v49 }
 0x5be   : > { %v422_v51 = vpack.c.bf16 %v421_v50, %v421_v50 }
 0x5c0   : > { %424 = vst.msk [vmem:[%s186_s28] sm:$0xf] %vm423_vm4, %v422_v51 }
 0x5c1 PF: > { %s12_s11 = sadd.s32 1, %s623_s11   ;;  %s715_s9 = smov %s619_s10 }
 0x5c2   : > { %p9_p5 = scmp.ge.s32.totalorder %s12_s11, 4   ;;  %s716_s10 = smov %s718_s12 }
 0x5c4   :  { %11 = sbr.rel (!%p9_p5) target bundleno = 2 (0x2), region = 61 }

// kernel: _lambda_.15
= control target key start
LH: loop header
LB: loop body
LE: loop exit
PB: predicated region body
PF: predicated region fallthrough
CT: control target
= control target key end

     0   :  { %v206_v0 = vmov 0.0   ;;  %vm207_vm0 = vmmov 0   ;;  %vm54_vm1 = vcmask 261120   ;;  %vm164_vm2 = vcmask 257024   ;;  %s275_s1 = inlined_call_operand.vmem [shape: bf16[32,32], index: 1, kind: input, shape index: {}]   ;;  %s276_s0 = inlined_call_operand.vmem [shape: bf16[16,32], index: 0, kind: input, shape index: {}]   ;;  %s277_s3 = inlined_call_operand.vmem [shape: bf16[16,32], index: 3, kind: input, shape index: {}]   ;;  %s278_s2 = inlined_call_operand.vmem [shape: f32[1,32], index: 2, kind: input, shape index: {}]   ;;  %s279_s4 = inlined_call_operand.vmem [shape: f32[1,32], index: 4, kind: input, shape index: {}]   ;;  %s280_s5 = inlined_call_operand.vmem [shape: f32[1,32], index: 5, kind: input, shape index: {}]   ;;  %s281_s6 = inlined_call_operand.vmem [shape: bf16[16,32], index: 6, kind: output, shape index: {}]  }
   0x1   :  { %189 = vmatprep.subr.bf16.mxu0 %v206_v0  ;;  %v199_v1 = vld [vmem:[%s275_s1 + $0x8] sm:$0xff]   ;;  %193 = vmatprep.mubr.msk.bf16.mxu0 %vm207_vm0, %v206_v0  ;;  %v200_v2 = vld [vmem:[%s275_s1] sm:$0xff]  }
   0x2   :  { %190 = vmatpush3.bf16.msra.mxu0 %v199_v1  ;;  %v201_v3 = vld [vmem:[%s276_s0] sm:$0xff]  }
   0x3   :  { %191 = vmatprep.subr.bf16.mxu0 %v206_v0  ;;  %v183_v4 = vld [vmem:[%s277_s3] sm:$0xff]  }
   0x4   :  { %v171_v5 = vld [vmem:[%s278_s2] ss:$0 sm:$0xff]  ;;  %v184_v6 = vunpack.c.l.bf16 %v183_v4  ;;  %v185_v11 = vunpack.c.h.bf16 %v183_v4 }
   0x5   :  { %v176_v40 = vld [vmem:[%s279_s4] ss:$0 sm:$0xff] }
   0x6   :  { %192 = vmatpush3.bf16.msra.mxu0 %v200_v2  ;;  %v177_v42 = vld [vmem:[%s280_s5] ss:$0 sm:$0xff] }
   0x9   :  { %194 = vmatmul.mubr.msk.bf16.vlgmr.msra.gmra.mxu0 %vm54_vm1, %v201_v3 }
  0xc9   :  { %v92_v7 = vpop.f32.mrf.mxu0 }
  0xca   :  { %v93_v8 = vadd.f32 %v171_v5, %v92_v7 }
  0xcb   :  { %v195_v9 = vpop.f32.mrf.mxu0 }
  0xcc   :  { %v103_v10 = vadd.f32 %v184_v6, %v93_v8 }
  0xcd   :  { %v95_v12 = vpop.f32.mrf.mxu0 }
  0xce   :  { %v96_v13 = vadd.f32 %v171_v5, %v95_v12  ;;  %v105_v14 = vsel %vm54_vm1, %v103_v10, 0.0  ;;  %v114_v15 = vmul.f32 %v103_v10, %v103_v10 }
  0xcf   :  { %106 = vadd.xlane.f32.xlu0 %v105_v14  ;;  %v196_v16 = vpop.f32.mrf.mxu0 }
  0xd0   :  { %v104_v17 = vadd.f32 %v185_v11, %v96_v13  ;;  %v116_v18 = vsel %vm54_vm1, %v114_v15, 0.0 }
  0xd1   :  { %117 = vadd.xlane.f32.xlu1 %v116_v18 }
  0xd2   :  { %v108_v19 = vsel %vm54_vm1, %v104_v17, 0.0  ;;  %v115_v20 = vmul.f32 %v104_v17, %v104_v17 }
  0xd3   :  { %109 = vadd.xlane.f32.xlu0 %v108_v19 }
  0xd4   :  { %v119_v21 = vsel %vm54_vm1, %v115_v20, 0.0 }
  0xd5   :  { %120 = vadd.xlane.f32.xlu1 %v119_v21 }
 0x158   :  { %v107_v22 = vpop.xlane.xlu0 %106 }
 0x159   :  { %v112_v23 = vmul.f32 0.03125, %v107_v22 }
 0x15a   :  { %v118_v24 = vpop.xlane.xlu1 %117 }
 0x15b   :  { %v124_v25 = vmul.f32 %v112_v23, %v112_v23  ;;  %v122_v26 = vmul.f32 0.03125, %v118_v24  ;;  %v130_v38 = vsub.f32 %v103_v10, %v112_v23 }
 0x15c   :  { %v110_v27 = vpop.xlane.xlu0 %109 }
 0x15d   :  { %v126_v28 = vsub.f32 %v122_v26, %v124_v25  ;;  %v113_v29 = vmul.f32 0.03125, %v110_v27 }
 0x15e   :  { %v121_v30 = vpop.xlane.xlu1 %120 }
 0x15f   :  { %v128_v31 = vmax.f32 %v126_v28, 0.0  ;;  %v125_v32 = vmul.f32 %v113_v29, %v113_v29  ;;  %v123_v33 = vmul.f32 0.03125, %v121_v30  ;;  %v131_v44 = vsub.f32 %v104_v17, %v113_v29 }
 0x161   :  { %v132_v34 = vadd.f32 1e-12, %v128_v31  ;;  %v127_v35 = vsub.f32 %v123_v33, %v125_v32 }
 0x163   :  { %202 = vrsqrt.f32 %v132_v34  ;;  %v129_v36 = vmax.f32 %v127_v35, 0.0 }
 0x165   :  { %v133_v37 = vadd.f32 1e-12, %v129_v36 }
 0x167   :  { %204 = vrsqrt.f32 %v133_v37 }
 0x170   :  { %v203_v39 = vpop.eup %202 }
 0x171   :  { %v136_v41 = vmul.f32 %v203_v39, %v130_v38 }
 0x173   :  { %v145_v43 = vmul.f32 %v176_v40, %v136_v41 }
 0x174   :  { %v205_v45 = vpop.eup %204 }
 0x175   :  { %v154_v46 = vadd.f32 %v177_v42, %v145_v43  ;;  %v137_v47 = vmul.f32 %v205_v45, %v131_v44 }
 0x177   :  { %v180_v48 = vpack.c.bf16 %v154_v46, %v154_v46  ;;  %v146_v49 = vmul.f32 %v176_v40, %v137_v47 }
 0x179   :  { %165 = vst.msk [vmem:[%s281_s6] sm:$0xf] %vm164_vm2, %v180_v48  ;;  %v155_v50 = vadd.f32 %v177_v42, %v146_v49 }
 0x17b   :  { %v181_v51 = vpack.c.bf16 %v155_v50, %v155_v50 }
 0x17d   :  { %166 = vst.msk [vmem:[%s281_s6 + $0x4] sm:$0xf] %vm164_vm2, %v181_v51 }

// kernel: _lambda_.16
= control target key start
LH: loop header
LB: loop body
LE: loop exit
PB: predicated region body
PF: predicated region fallthrough
CT: control target
= control target key end

     0   :  { %v152_v0 = vmov 0.0   ;;  %vm153_vm0 = vmmov 0   ;;  %vm45_vm1 = vcmask 261120   ;;  %vm116_vm2 = vcmask 519168   ;;  %s192_s1 = inlined_call_operand.vmem [shape: bf16[32,64], index: 1, kind: input, shape index: {}]   ;;  %s193_s0 = inlined_call_operand.vmem [shape: bf16[16,32], index: 0, kind: input, shape index: {}]   ;;  %s194_s2 = inlined_call_operand.vmem [shape: f32[1,64], index: 2, kind: input, shape index: {}]   ;;  %s195_s3 = inlined_call_operand.vmem [shape: bf16[16,64], index: 3, kind: output, shape index: {}]  }
   0x1   :  { %135 = vmatprep.subr.bf16.mxu0 %v152_v0  ;;  %v145_v1 = vld [vmem:[%s192_s1 + $0x8] sm:$0xff]   ;;  %139 = vmatprep.mubr.msk.bf16.mxu0 %vm153_vm0, %v152_v0  ;;  %v146_v2 = vld [vmem:[%s192_s1] sm:$0xff]  }
   0x2   :  { %136 = vmatpush3.bf16.msra.mxu0 %v145_v1  ;;  %v147_v3 = vld [vmem:[%s193_s0] sm:$0xff]  }
   0x3   :  { %137 = vmatprep.subr.bf16.mxu0 %v152_v0  ;;  %v123_v4 = vld [vmem:[%s194_s2] ss:$0 sm:$0xff] }
   0x6   :  { %138 = vmatpush3.bf16.msra.mxu0 %v146_v2 }
   0x9   :  { %140 = vmatmul.mubr.msk.bf16.vlgmr.msra.gmra.mxu0 %vm45_vm1, %v147_v3 }
  0xc9   :  { %v83_v5 = vpop.f32.mrf.mxu0 }
  0xca   :  { %v84_v6 = vadd.f32 %v123_v4, %v83_v5 }
  0xcb   :  { %v141_v7 = vpop.f32.mrf.mxu0 }
  0xcc   :  { %v92_v8 = vmul.f32 0.044715, %v84_v6  ;;  %v90_v22 = vmul.f32 0.5, %v84_v6 }
  0xcd   :  { %v86_v9 = vpop.f32.mrf.mxu0 }
  0xce   :  { %v94_v10 = vmul.f32 %v92_v8, %v84_v6  ;;  %v87_v11 = vadd.f32 %v123_v4, %v86_v9 }
  0xcf   :  { %v142_v12 = vpop.f32.mrf.mxu0 }
  0xd0   :  { %v96_v13 = vmul.f32 %v94_v10, %v84_v6  ;;  %v93_v14 = vmul.f32 0.044715, %v87_v11  ;;  %v91_v27 = vmul.f32 0.5, %v87_v11 }
  0xd2   :  { %v98_v15 = vadd.f32 %v96_v13, %v84_v6  ;;  %v95_v16 = vmul.f32 %v93_v14, %v87_v11 }
  0xd4   :  { %v100_v17 = vmul.f32 0.7978846, %v98_v15  ;;  %v97_v18 = vmul.f32 %v95_v16, %v87_v11 }
  0xd6   :  { %148 = vtanh.f32 %v100_v17  ;;  %v99_v19 = vadd.f32 %v97_v18, %v87_v11 }
  0xd8   :  { %v101_v20 = vmul.f32 0.7978846, %v99_v19 }
  0xda   :  { %150 = vtanh.f32 %v101_v20 }
  0xe3   :  { %v149_v21 = vpop.eup %148 }
  0xe4   :  { %v104_v23 = vadd.f32 1.0, %v149_v21 }
  0xe6   :  { %v106_v24 = vmul.f32 %v104_v23, %v90_v22 }
  0xe7   :  { %v151_v25 = vpop.eup %150 }
  0xe8   :  { %v130_v26 = vpack.c.bf16 %v106_v24, %v106_v24  ;;  %v105_v28 = vadd.f32 1.0, %v151_v25 }
  0xea   :  { %117 = vst.msk [vmem:[%s195_s3] sm:$0xf] %vm116_vm2, %v130_v26  ;;  %v107_v29 = vmul.f32 %v105_v28, %v91_v27 }
  0xec   :  { %v131_v30 = vpack.c.bf16 %v107_v29, %v107_v29 }
  0xee   :  { %118 = vst.msk [vmem:[%s195_s3 + $0x4] sm:$0xf] %vm116_vm2, %v131_v30 }

// kernel: _lambda_.17
= control target key start
LH: loop header
LB: loop body
LE: loop exit
PB: predicated region body
PF: predicated region fallthrough
CT: control target
= control target key end

     0   :  { %v233_v0 = vmov 0.0   ;;  %vm234_vm0 = vmmov 0   ;;  %vm70_vm1 = vcmask 523264   ;;  %vm121_vm2 = vcmask 261120   ;;  %s303_s1 = inlined_call_operand.vmem [shape: bf16[64,32], index: 1, kind: input, shape index: {}]   ;;  %s304_s0 = inlined_call_operand.vmem [shape: bf16[16,64], index: 0, kind: input, shape index: {}]   ;;  %s305_s3 = inlined_call_operand.vmem [shape: bf16[16,32], index: 3, kind: input, shape index: {}]   ;;  %s306_s2 = inlined_call_operand.vmem [shape: f32[1,32], index: 2, kind: input, shape index: {}]   ;;  %s307_s4 = inlined_call_operand.vmem [shape: f32[1,32], index: 4, kind: input, shape index: {}]   ;;  %s308_s5 = inlined_call_operand.vmem [shape: f32[1,32], index: 5, kind: input, shape index: {}]   ;;  %s309_s6 = inlined_call_operand.vmem [shape: bf16[16,32], index: 6, kind: output, shape index: {}]  }
   0x1   :  { %210 = vmatprep.subr.bf16.mxu0 %v233_v0  ;;  %v224_v1 = vld [vmem:[%s303_s1 + $0x18] sm:$0xff]   ;;  %218 = vmatprep.mubr.msk.bf16.mxu0 %vm234_vm0, %v233_v0  ;;  %v225_v2 = vld [vmem:[%s303_s1 + $0x10] sm:$0xff]   ;;  %v226_v3 = vld [vmem:[%s303_s1 + $0x8] sm:$0xff]   ;;  %vm181_vm3 = vcmask 257024  }
   0x2   :  { %211 = vmatpush3.bf16.msra.mxu0 %v224_v1  ;;  %v227_v4 = vld [vmem:[%s303_s1] sm:$0xff]  }
   0x3   :  { %212 = vmatprep.subr.bf16.mxu0 %v233_v0  ;;  %v228_v5 = vld [vmem:[%s304_s0] sm:$0xff]  }
   0x4   :  { %v202_v6 = vld [vmem:[%s305_s3] sm:$0xff]  }
   0x5   :  { %v188_v7 = vld [vmem:[%s306_s2] ss:$0 sm:$0xff]  ;;  %v203_v8 = vunpack.c.l.bf16 %v202_v6  ;;  %v204_v13 = vunpack.c.h.bf16 %v202_v6 }
   0x6   :  { %213 = vmatpush3.bf16.msra.mxu0 %v225_v2  ;;  %v195_v42 = vld [vmem:[%s307_s4] ss:$0 sm:$0xff] }
   0x7   :  { %214 = vmatprep.subr.bf16.mxu0 %v233_v0  ;;  %v196_v44 = vld [vmem:[%s308_s5] ss:$0 sm:$0xff] }
   0xa   :  { %215 = vmatpush3.bf16.msra.mxu0 %v226_v3 }
   0xb   :  { %216 = vmatprep.subr.bf16.mxu0 %v233_v0 }
   0xe   :  { %217 = vmatpush3.bf16.msra.mxu0 %v227_v4 }
  0x11   :  { %219 = vmatmul.mubr.msk.bf16.vlgmr.msra.gmra.mxu0 %vm70_vm1, %v228_v5 }
  0xd1   :  { %v108_v9 = vpop.f32.mrf.mxu0 }
  0xd2   :  { %v109_v10 = vadd.f32 %v188_v7, %v108_v9 }
  0xd3   :  { %v220_v11 = vpop.f32.mrf.mxu0 }
  0xd4   :  { %v119_v12 = vadd.f32 %v203_v8, %v109_v10 }
  0xd5   :  { %v111_v14 = vpop.f32.mrf.mxu0 }
  0xd6   :  { %v112_v15 = vadd.f32 %v188_v7, %v111_v14  ;;  %v122_v16 = vsel %vm121_vm2, %v119_v12, 0.0  ;;  %v131_v17 = vmul.f32 %v119_v12, %v119_v12 }
  0xd7   :  { %123 = vadd.xlane.f32.xlu0 %v122_v16  ;;  %v221_v18 = vpop.f32.mrf.mxu0 }
  0xd8   :  { %v120_v19 = vadd.f32 %v204_v13, %v112_v15  ;;  %v133_v20 = vsel %vm121_vm2, %v131_v17, 0.0 }
  0xd9   :  { %134 = vadd.xlane.f32.xlu1 %v133_v20 }
  0xda   :  { %v125_v21 = vsel %vm121_vm2, %v120_v19, 0.0  ;;  %v132_v22 = vmul.f32 %v120_v19, %v120_v19 }
  0xdb   :  { %126 = vadd.xlane.f32.xlu0 %v125_v21 }
  0xdc   :  { %v136_v23 = vsel %vm121_vm2, %v132_v22, 0.0 }
  0xdd   :  { %137 = vadd.xlane.f32.xlu1 %v136_v23 }
 0x160   :  { %v124_v24 = vpop.xlane.xlu0 %123 }
 0x161   :  { %v129_v25 = vmul.f32 0.03125, %v124_v24 }
 0x162   :  { %v135_v26 = vpop.xlane.xlu1 %134 }
 0x163   :  { %v141_v27 = vmul.f32 %v129_v25, %v129_v25  ;;  %v139_v28 = vmul.f32 0.03125, %v135_v26  ;;  %v147_v40 = vsub.f32 %v119_v12, %v129_v25 }
 0x164   :  { %v127_v29 = vpop.xlane.xlu0 %126 }
 0x165   :  { %v143_v30 = vsub.f32 %v139_v28, %v141_v27  ;;  %v130_v31 = vmul.f32 0.03125, %v127_v29 }
 0x166   :  { %v138_v32 = vpop.xlane.xlu1 %137 }
 0x167   :  { %v145_v33 = vmax.f32 %v143_v30, 0.0  ;;  %v142_v34 = vmul.f32 %v130_v31, %v130_v31  ;;  %v140_v35 = vmul.f32 0.03125, %v138_v32  ;;  %v148_v46 = vsub.f32 %v120_v19, %v130_v31 }
 0x169   :  { %v149_v36 = vadd.f32 1e-12, %v145_v33  ;;  %v144_v37 = vsub.f32 %v140_v35, %v142_v34 }
 0x16b   :  { %229 = vrsqrt.f32 %v149_v36  ;;  %v146_v38 = vmax.f32 %v144_v37, 0.0 }
 0x16d   :  { %v150_v39 = vadd.f32 1e-12, %v146_v38 }
 0x16f   :  { %231 = vrsqrt.f32 %v150_v39 }
 0x178   :  { %v230_v41 = vpop.eup %229 }
 0x179   :  { %v153_v43 = vmul.f32 %v230_v41, %v147_v40 }
 0x17b   :  { %v162_v45 = vmul.f32 %v195_v42, %v153_v43 }
 0x17c   :  { %v232_v47 = vpop.eup %231 }
 0x17d   :  { %v171_v48 = vadd.f32 %v196_v44, %v162_v45  ;;  %v154_v49 = vmul.f32 %v232_v47, %v148_v46 }
 0x17f   :  { %v199_v50 = vpack.c.bf16 %v171_v48, %v171_v48  ;;  %v163_v51 = vmul.f32 %v195_v42, %v154_v49 }
 0x181   :  { %182 = vst.msk [vmem:[%s309_s6] sm:$0xf] %vm181_vm3, %v199_v50  ;;  %v172_v52 = vadd.f32 %v196_v44, %v163_v51 }
 0x183   :  { %v200_v53 = vpack.c.bf16 %v172_v52, %v172_v52 }
 0x185   :  { %183 = vst.msk [vmem:[%s309_s6 + $0x4] sm:$0xf] %vm181_vm3, %v200_v53 }

// kernel: _lambda_.23
= control target key start
LH: loop header
LB: loop body
LE: loop exit
PB: predicated region body
PF: predicated region fallthrough
CT: control target
= control target key end

     0   :  { %v145_v1 = vmov 0.0   ;;  %vm146_vm0 = vmmov 0   ;;  %s183_s0 = inlined_call_operand.vmem [shape: bf16[2,32], index: 0, kind: input, shape index: {}]   ;;  %s184_s1 = inlined_call_operand.vmem [shape: bf16[32,32], index: 1, kind: input, shape index: {}]   ;;  %s185_s2 = inlined_call_operand.vmem [shape: f32[1,32], index: 2, kind: input, shape index: {}]   ;;  %s186_s3 = inlined_call_operand.hbm [shape: f32[2,32], index: 3, kind: output, shape index: {}]  }
   0x1   :  { %v119_v0 = vld [vmem:[%s184_s1 + $0x8] sm:$0xff]   ;;  %108 = vmatprep.subr.bf16.mxu0 %v145_v1  ;;  %v120_v2 = vld [vmem:[%s184_s1] sm:$0xff]   ;;  %112 = vmatprep.mubr.msk.bf16.mxu0 %vm146_vm0, %v145_v1 }
   0x2   :  { %109 = vmatpush3.bf16.msra.mxu0 %v119_v0 }
   0x3   :  { %110 = vmatprep.subr.bf16.mxu0 %v145_v1 }
   0x4   :  { %8 = vsyncpa [#allocation3], 0  ;;  %v16_v3 = vld [vmem:[%s183_s0] sm:$0x1]  ;;  %vm40_vm1 = vcmask 261120   ;;  %s147_s1 = smov [#allocation2]  }
   0x5   :  { %v101_v4 = vld [vmem:[%s185_s2] ss:$0 sm:$0xff]  ;;  %s93_s20 = sshll.u32 %s147_s1, 4  ;;  %vm85_vm2 = vcmask 254976   ;;  %s94_s20 = int_to_ptr.vmem [resolvable:$true] %s93_s20 }
   0x6   :  { %111 = vmatpush3.bf16.msra.mxu0 %v120_v2  ;;  %s123_s21 = scalar_lea.vmem %s94_s20, 32  ;;  %p128_p1 = scmp.lt.s32.totalorder %s94_s20, %s94_s20 }
   0x7   :  { %p124_p0 = scmp.ne.s32.totalorder %s94_s20, %s123_s21  ;;  %p129_p2 = scmp.lt.s32.totalorder %s123_s21, %s123_s21 }
   0x9   :  { %113 = vmatmul.mubr.msk.bf16.vlgmr.msra.gmra.mxu0 %vm40_vm1, %v16_v3  ;;  %p130_p3 = por %p129_p2, %p128_p1 }
   0xb   :  { %p131_p4 = pnand %p130_p3, %p124_p0 }
  0xc9   :  { %v78_v5 = vpop.f32.mrf.mxu0 }
  0xca   :  { %v79_v6 = vadd.f32 %v101_v4, %v78_v5 }
  0xcb   :  { %v114_v7 = vpop.f32.mrf.mxu0 }
  0xcc   :  { %121 = vtanh.f32 %v79_v6 }
  0xcd   :  { %v81_v8 = vpop.f32.mrf.mxu0 }
  0xcf   :  { %v115_v9 = vpop.f32.mrf.mxu0 }
  0xd9   :  { %v122_v10 = vpop.eup %121 }
  0xda   :  { %86 = vst.msk [vmem:[#allocation2] sm:$0x3] %vm85_vm2, %v122_v10 }
  0xdb   :  { %134 = shalt.err (!%p131_p4)
}
  0xdc   :  { %96 = dma.vmem_to_hbm [thread:$0]  %s94_s20, 32, %s186_s3, [#allocation3]  }
  0xdd   :  { %143 = dma.done.wait [#allocation3], 32  }
  0xde   :  { %144 = vsyncadd [#allocation3], 4294967264 }
  0xdf   :  { %100 = vsyncpa [#allocation3], 1 }

</bundles_post_ra>
